<compile_context>
chip_gen: v7x
topology: tpu7x:2x2x1
jax: 0.10.0
libtpu: 0.0.40
codegen_flags: <defaults>
</compile_context>

<pallas_src>
from functools import partial

import jax
import jax.numpy as jnp
from jax.experimental import pallas as pl
from jax.experimental.pallas import tpu as pltpu

# ---- module config (PyTorch defaults) ----
DILATION = 2
KERNEL_SIZE = 3
RES_CH = 32
GATE_CH = 32
SKIP_CH = 512


def residual_layer_kernel(x_ref, wdT_ref, bd_ref, wrsT_ref, brs_ref,
                          res_ref, skip_ref, *, dilation, ksize, tile_t, res_ch):
    halo = dilation * (ksize - 1)
    tt = pl.program_id(1)
    t0 = tt * tile_t
    if tile_t % 128 == 0:          # trace-time branch: alignment hint for the lane slice
        t0 = pl.multiple_of(t0, 128)

    # Window of the (C_res, T) input covering this output tile plus left context.
    x_win = x_ref[0, :, pl.ds(t0, tile_t + halo)]                 # (C_res, tile_t+halo) f32

    # Channel-axis im2col: one K = ksize*C_res matmul instead of ksize tiny K=C_res ones.
    taps = [x_win[:, k * dilation:k * dilation + tile_t] for k in range(ksize)]
    slab = jnp.concatenate(taps, axis=0).astype(jnp.bfloat16)     # (ksize*C_res, tile_t)

    convT = jnp.dot(wdT_ref[...], slab,
                    preferred_element_type=jnp.float32) + bd_ref[...]   # (gate, tile_t) f32

    # Gated activation in f32, lane-dense (time on lanes).
    zT = jnp.tanh(convT) * jax.nn.sigmoid(convT)                  # (gate, tile_t)

    # Fused residual+skip 1x1 convs: one (res+skip, gate) @ (gate, tile_t) matmul.
    outT = jnp.dot(wrsT_ref[...], zT.astype(jnp.bfloat16),
                   preferred_element_type=jnp.float32) + brs_ref[...]   # (res+skip, tile_t)

    # Residual add reuses the (f32) last tap == the correctly left-clipped input.
    res_ref[0] = (outT[:res_ch] + taps[ksize - 1]).astype(res_ref.dtype)
    skip_ref[0] = outT[res_ch:].astype(skip_ref.dtype)


def _pick_tile_t(t_out):
    # Keep tiles modest so 2x-buffered (skip) blocks + kernel temporaries fit v7x's
    # 64 MiB VMEM with margin; bigger tiles are legal on v5e/v6e but not required here.
    for cand in (1024, 512, 256, 128):
        if t_out % cand == 0:
            return cand
    return t_out   # single full-extent block (allowed: equals the full output dim)


def residual_layer(x_nct, wd, bd, wr, br, ws, bs, *,
                   dilation=DILATION, ksize=KERNEL_SIZE):
    """x_nct: (B, C_res, T) float32 (PyTorch NCT layout).

    Returns (residual (B, C_res, T_out), skip (B, C_skip, T_out)) in NCT layout.
    Weights: wd (ksize, C_res, gate), bd (gate,), wr (gate, C_res), br (C_res,),
             ws (gate, C_skip), bs (C_skip,).
    """
    B, C, T = x_nct.shape
    halo = dilation * (ksize - 1)
    t_out = T - halo
    gate_ch = wd.shape[2]
    res_ch = wr.shape[1]
    skip_ch = ws.shape[1]

    tile_t = _pick_tile_t(t_out)
    num_tt = t_out // tile_t

    # Fused / transposed weights for the (C, T) layout; bf16 MXU operands, f32 biases.
    wdT = jnp.transpose(jnp.reshape(wd, (ksize * C, gate_ch))).astype(jnp.bfloat16)   # (gate, 3*C_res)
    bd_col = jnp.reshape(bd, (gate_ch, 1)).astype(jnp.float32)
    wrsT = jnp.concatenate([wr.T, ws.T], axis=0).astype(jnp.bfloat16)                 # (res+skip, gate)
    brs_col = jnp.reshape(jnp.concatenate([br, bs], axis=0),
                          (res_ch + skip_ch, 1)).astype(jnp.float32)

    kernel = partial(residual_layer_kernel, dilation=dilation, ksize=ksize,
                     tile_t=tile_t, res_ch=res_ch)

    res, skip = pl.pallas_call(
        kernel,
        out_shape=(
            jax.ShapeDtypeStruct((B, res_ch, t_out), x_nct.dtype),
            jax.ShapeDtypeStruct((B, skip_ch, t_out), x_nct.dtype),
        ),
        grid_spec=pltpu.PrefetchScalarGridSpec(
            num_scalar_prefetch=0,
            grid=(B, num_tt),
            in_specs=[
                # Full (C, T) per batch; constant across the time-tile axis, so it is
                # DMA'd once per batch and the kernel slices the haloed window itself.
                pl.BlockSpec((1, C, T), lambda b, t: (b, 0, 0)),
                pl.BlockSpec((gate_ch, ksize * C), lambda b, t: (0, 0)),        # fused dilated W^T
                pl.BlockSpec((gate_ch, 1), lambda b, t: (0, 0)),                # dilated bias
                pl.BlockSpec((res_ch + skip_ch, gate_ch), lambda b, t: (0, 0)), # fused 1x1 W^T
                pl.BlockSpec((res_ch + skip_ch, 1), lambda b, t: (0, 0)),       # fused 1x1 bias
            ],
            out_specs=[
                pl.BlockSpec((1, res_ch, tile_t), lambda b, t: (b, 0, t)),
                pl.BlockSpec((1, skip_ch, tile_t), lambda b, t: (b, 0, t)),
            ],
        ),
        compiler_params=pltpu.CompilerParams(
            dimension_semantics=("parallel", "parallel"),
            vmem_limit_bytes=32 * 1024 * 1024,
        ),
    )(x_nct, wdT, bd_col, wrsT, brs_col)
    return res, skip


def ref_forward(x_nct, wd, bd, wr, br, ws, bs, dilation, ksize):
    """Pure-JAX f32 reference of the PyTorch forward (NCT in, NCT out)."""
    x = jnp.transpose(x_nct, (0, 2, 1))                      # (B, T, C)
    t_out = x.shape[1] - dilation * (ksize - 1)
    conv = sum(
        jnp.einsum("btc,cg->btg", x[:, k * dilation:k * dilation + t_out, :], wd[k])
        for k in range(ksize)
    ) + bd[None, None, :]
    z = jnp.tanh(conv) * jax.nn.sigmoid(conv)
    res = jnp.einsum("btg,gr->btr", z, wr) + br[None, None, :] + x[:, (ksize - 1) * dilation:, :]
    skip = jnp.einsum("btg,gs->bts", z, ws) + bs[None, None, :]
    return jnp.transpose(res, (0, 2, 1)), jnp.transpose(skip, (0, 2, 1))


if __name__ == "__main__":
    key = jax.random.PRNGKey(0)
    k0, k1, k2, k3, k4, k5, k6 = jax.random.split(key, 7)

    # PyTorch conv1d weight is (out, in, k); stored here as (k, in, out) / (in, out).
    wd = jax.random.normal(k1, (KERNEL_SIZE, RES_CH, GATE_CH), jnp.float32) * 0.1
    bd = jax.random.normal(k2, (GATE_CH,), jnp.float32) * 0.1
    wr = jax.random.normal(k3, (GATE_CH, RES_CH), jnp.float32) * 0.1
    br = jax.random.normal(k4, (RES_CH,), jnp.float32) * 0.1
    ws = jax.random.normal(k5, (GATE_CH, SKIP_CH), jnp.float32) * 0.1
    bs = jax.random.normal(k6, (SKIP_CH,), jnp.float32) * 0.1

    # (B, T) = (2, 260): exercises the tiled path (2 time tiles of 128).
    # (B, T) = (2, 16): tiny single-tile path (full-extent output block).
    for B, T in ((2, 260), (2, 16)):
        x_nct = jax.random.normal(jax.random.fold_in(k0, T), (B, RES_CH, T), jnp.float32)

        res, skip = residual_layer(x_nct, wd, bd, wr, br, ws, bs)
        jax.block_until_ready((res, skip))

        t_out = T - DILATION * (KERNEL_SIZE - 1)
        res_ref, skip_ref = ref_forward(x_nct, wd, bd, wr, br, ws, bs, DILATION, KERNEL_SIZE)

        assert res.shape == (B, RES_CH, t_out)
        assert skip.shape == (B, SKIP_CH, t_out)
        # bf16 MXU operands (f32 accumulation) vs the pure-f32 reference -> loose tol.
        assert jnp.allclose(res, res_ref, atol=5e-2, rtol=5e-2)
        assert jnp.allclose(skip, skip_ref, atol=5e-2, rtol=5e-2)

    print("KERNEL_OK")
</pallas_src>

<mosaic_0001>
module attributes {stable_mosaic.version = 11 : i64} {
  func.func @residual_layer_kernel(%arg0: i32, %arg1: i32, %arg2: memref<1x32x260xf32, #tpu.memory_space<vmem>>, %arg3: memref<32x96xbf16, #tpu.memory_space<vmem>>, %arg4: memref<32x1xf32, #tpu.memory_space<vmem>>, %arg5: memref<544x32xbf16, #tpu.memory_space<vmem>>, %arg6: memref<544x1xf32, #tpu.memory_space<vmem>>, %arg7: memref<1x32x256xf32, #tpu.memory_space<vmem>>, %arg8: memref<1x512x256xf32, #tpu.memory_space<vmem>>) attributes {dimension_semantics = [#tpu.dimension_semantics<parallel>, #tpu.dimension_semantics<parallel>], iteration_bounds = array<i64: 2, 1>, scalar_prefetch = 0 : i64, scratch_operands = 0 : i64, tpu.core_type = #tpu.core_type<tc>, window_params = [{transform_indices = @transform_0, window_bounds = array<i64: 1, 32, 260>}, {pipeline_mode = #tpu.pipeline_mode<synchronous>, transform_indices = @transform_1, window_bounds = array<i64: 32, 96>}, {pipeline_mode = #tpu.pipeline_mode<synchronous>, transform_indices = @transform_2, window_bounds = array<i64: 32, 1>}, {pipeline_mode = #tpu.pipeline_mode<synchronous>, transform_indices = @transform_3, window_bounds = array<i64: 544, 32>}, {pipeline_mode = #tpu.pipeline_mode<synchronous>, transform_indices = @transform_4, window_bounds = array<i64: 544, 1>}, {transform_indices = @transform_5, window_bounds = array<i64: 1, 32, 256>}, {transform_indices = @transform_6, window_bounds = array<i64: 1, 512, 256>}]} {
    %c256_i32 = arith.constant 256 : i32
    %0 = arith.muli %arg1, %c256_i32 : i32
    %1 = tpu.assume_multiple %0, 128 : i32
    %c0 = arith.constant 0 : index
    %c0_0 = arith.constant 0 : index
    %2 = arith.index_cast %1 : i32 to index
    %3 = vector.load %arg2[%c0, %c0_0, %2] : memref<1x32x260xf32, #tpu.memory_space<vmem>>, vector<1x32x260xf32>
    %4 = vector.shape_cast %3 : vector<1x32x260xf32> to vector<32x260xf32>
    %5 = vector.extract_strided_slice %4 {offsets = [0, 0], sizes = [32, 256], strides = [1, 1]} : vector<32x260xf32> to vector<32x256xf32>
    %6 = vector.extract_strided_slice %4 {offsets = [0, 2], sizes = [32, 256], strides = [1, 1]} : vector<32x260xf32> to vector<32x256xf32>
    %7 = vector.extract_strided_slice %4 {offsets = [0, 4], sizes = [32, 256], strides = [1, 1]} : vector<32x260xf32> to vector<32x256xf32>
    %8 = tpu.concatenate %5, %6, %7 in 0 : vector<32x256xf32>, vector<32x256xf32>, vector<32x256xf32> -> vector<96x256xf32>
    %9 = arith.truncf %8 : vector<96x256xf32> to vector<96x256xbf16>
    %c0_1 = arith.constant 0 : index
    %c0_2 = arith.constant 0 : index
    %10 = vector.load %arg3[%c0_1, %c0_2] : memref<32x96xbf16, #tpu.memory_space<vmem>>, vector<32x96xbf16>
    %cst = arith.constant dense<0.000000e+00> : vector<32x256xf32>
    %11 = tpu.matmul %10, %9, %cst {dimension_numbers = #tpu.dot_dimension_numbers<[1], [0], [0], [1], [0, 0, 1, 1], [], []>} : vector<32x96xbf16>, vector<96x256xbf16>, vector<32x256xf32> -> vector<32x256xf32>
    %c0_3 = arith.constant 0 : index
    %c0_4 = arith.constant 0 : index
    %12 = vector.load %arg4[%c0_3, %c0_4] : memref<32x1xf32, #tpu.memory_space<vmem>>, vector<32x1xf32>
    %13 = vector.broadcast %12 : vector<32x1xf32> to vector<32x256xf32>
    %14 = arith.addf %11, %13 : vector<32x256xf32>
    %15 = math.tanh %14 : vector<32x256xf32>
    %16 = arith.negf %14 : vector<32x256xf32>
    %17 = math.exp %16 : vector<32x256xf32>
    %cst_5 = arith.constant 1.000000e+00 : f32
    %18 = vector.broadcast %cst_5 : f32 to vector<32x256xf32>
    %19 = arith.addf %18, %17 : vector<32x256xf32>
    %20 = arith.divf %18, %19 : vector<32x256xf32>
    %21 = arith.mulf %15, %20 : vector<32x256xf32>
    %c0_6 = arith.constant 0 : index
    %c0_7 = arith.constant 0 : index
    %22 = vector.load %arg5[%c0_6, %c0_7] : memref<544x32xbf16, #tpu.memory_space<vmem>>, vector<544x32xbf16>
    %23 = arith.truncf %21 : vector<32x256xf32> to vector<32x256xbf16>
    %cst_8 = arith.constant dense<0.000000e+00> : vector<544x256xf32>
    %24 = tpu.matmul %22, %23, %cst_8 {dimension_numbers = #tpu.dot_dimension_numbers<[1], [0], [0], [1], [0, 0, 1, 1], [], []>} : vector<544x32xbf16>, vector<32x256xbf16>, vector<544x256xf32> -> vector<544x256xf32>
    %c0_9 = arith.constant 0 : index
    %c0_10 = arith.constant 0 : index
    %25 = vector.load %arg6[%c0_9, %c0_10] : memref<544x1xf32, #tpu.memory_space<vmem>>, vector<544x1xf32>
    %26 = vector.broadcast %25 : vector<544x1xf32> to vector<544x256xf32>
    %27 = arith.addf %24, %26 : vector<544x256xf32>
    %28 = vector.extract_strided_slice %27 {offsets = [0, 0], sizes = [32, 256], strides = [1, 1]} : vector<544x256xf32> to vector<32x256xf32>
    %29 = arith.addf %28, %7 : vector<32x256xf32>
    %c0_11 = arith.constant 0 : index
    %c0_12 = arith.constant 0 : index
    %c0_13 = arith.constant 0 : index
    %30 = vector.load %arg7[%c0_11, %c0_12, %c0_13] : memref<1x32x256xf32, #tpu.memory_space<vmem>>, vector<1x32x256xf32>
    %31 = vector.shape_cast %30 : vector<1x32x256xf32> to vector<32x256xf32>
    %32 = vector.shape_cast %29 : vector<32x256xf32> to vector<1x32x256xf32>
    tpu.vector_store %arg7[%c0_11, %c0_12, %c0_13], %32 {strides = array<i32>} : memref<1x32x256xf32, #tpu.memory_space<vmem>>, vector<1x32x256xf32>,
    %33 = vector.extract_strided_slice %27 {offsets = [32, 0], sizes = [512, 256], strides = [1, 1]} : vector<544x256xf32> to vector<512x256xf32>
    %c0_14 = arith.constant 0 : index
    %c0_15 = arith.constant 0 : index
    %c0_16 = arith.constant 0 : index
    %34 = vector.load %arg8[%c0_14, %c0_15, %c0_16] : memref<1x512x256xf32, #tpu.memory_space<vmem>>, vector<1x512x256xf32>
    %35 = vector.shape_cast %34 : vector<1x512x256xf32> to vector<512x256xf32>
    %36 = vector.shape_cast %33 : vector<512x256xf32> to vector<1x512x256xf32>
    tpu.vector_store %arg8[%c0_14, %c0_15, %c0_16], %36 {strides = array<i32>} : memref<1x512x256xf32, #tpu.memory_space<vmem>>, vector<1x512x256xf32>,
    return
  }
  func.func @transform_0(%arg0: i32, %arg1: i32) -> (i32, i32, i32) {
    %c0_i32 = arith.constant 0 : i32
    %c0_i32_0 = arith.constant 0 : i32
    %c0_i32_1 = arith.constant 0 : i32
    return %arg0, %c0_i32, %c0_i32_0 : i32, i32, i32
  }
  func.func @transform_1(%arg0: i32, %arg1: i32) -> (i32, i32) {
    %c0_i32 = arith.constant 0 : i32
    %c0_i32_0 = arith.constant 0 : i32
    %c0_i32_1 = arith.constant 0 : i32
    return %c0_i32, %c0_i32_0 : i32, i32
  }
  func.func @transform_2(%arg0: i32, %arg1: i32) -> (i32, i32) {
    %c0_i32 = arith.constant 0 : i32
    %c0_i32_0 = arith.constant 0 : i32
    %c0_i32_1 = arith.constant 0 : i32
    return %c0_i32, %c0_i32_0 : i32, i32
  }
  func.func @transform_3(%arg0: i32, %arg1: i32) -> (i32, i32) {
    %c0_i32 = arith.constant 0 : i32
    %c0_i32_0 = arith.constant 0 : i32
    %c0_i32_1 = arith.constant 0 : i32
    return %c0_i32, %c0_i32_0 : i32, i32
  }
  func.func @transform_4(%arg0: i32, %arg1: i32) -> (i32, i32) {
    %c0_i32 = arith.constant 0 : i32
    %c0_i32_0 = arith.constant 0 : i32
    %c0_i32_1 = arith.constant 0 : i32
    return %c0_i32, %c0_i32_0 : i32, i32
  }
  func.func @transform_5(%arg0: i32, %arg1: i32) -> (i32, i32, i32) {
    %c0_i32 = arith.constant 0 : i32
    %c0_i32_0 = arith.constant 0 : i32
    return %arg0, %c0_i32, %arg1 : i32, i32, i32
  }
  func.func @transform_6(%arg0: i32, %arg1: i32) -> (i32, i32, i32) {
    %c0_i32 = arith.constant 0 : i32
    %c0_i32_0 = arith.constant 0 : i32
    return %arg0, %c0_i32, %arg1 : i32, i32, i32
  }
}

</mosaic_0001>

<bundles_post_ra>
// kernel: tpu_custom_call.1
= control target key start
LH: loop header
LB: loop body
LE: loop exit
PB: predicated region body
PF: predicated region fallthrough
CT: control target
= control target key end

     0   :  { %12 = vsyncpa [#allocation3], 0  ;;  %s3281_s0 = inlined_call_operand.vmem [shape: f32[2,32,260], index: 0, kind: input, shape index: {}]   ;;  %s3282_s1 = inlined_call_operand.vmem [shape: bf16[32,96], index: 1, kind: input, shape index: {}]   ;;  %s3283_s2 = inlined_call_operand.vmem [shape: f32[32,1], index: 2, kind: input, shape index: {}]   ;;  %s3284_s3 = inlined_call_operand.vmem [shape: bf16[544,32], index: 3, kind: input, shape index: {}]   ;;  %s3285_s4 = inlined_call_operand.vmem [shape: f32[544,1], index: 4, kind: input, shape index: {}]   ;;  %s3286_s5 = inlined_call_operand.hbm [shape: f32[2,32,256], index: 5, kind: output, shape index: {0}]   ;;  %s3287_s6 = inlined_call_operand.hbm [shape: f32[2,512,256], index: 6, kind: output, shape index: {1}]  }
   0x1   :  { %14 = vsyncpa [#allocation3 + $0x1], 0 }
   0x2   :  { %15 = vsyncpa [#allocation5], 0 }
   0x3   :  { %17 = vsyncpa [#allocation5 + $0x1], 0  ;;  %s2422_s21 = smov 0   ;;  %s2424_s22 = smov 0  }
   0x4   :  { %s2426_s23 = smov 0   ;;  %s2428_s24 = smov 0  }
   0x5   :  { %s2430_s25 = smov 0   ;;  %s2432_s26 = smov 0  }
   0x6 LB: > { %s1984_s27 = sadd.s32 4294967295, %s2378_s26   ;;  %s1985_s28 = sadd.s32 4294967294, %s2378_s26   ;;  %s2378_s26 = sphi %s2432_s26, %s23_s26   ;;  %s2374_s25 = sphi %s2430_s25, %s3294_s25   ;;  %s2370_s24 = sphi %s2428_s24, %s3293_s24   ;;  %s2366_s23 = sphi %s2426_s23, %s3292_s23   ;;  %s2362_s22 = sphi %s2424_s22, %s3291_s22   ;;  %s2358_s21 = sphi %s2422_s21, %s3290_s21  }
   0x7   : > { %s35_s29 = sadd.s32 1, %s2374_s25  ;;  %s154_s30 = sadd.s32 1, %s2366_s23 }
   0x8   : > { %p37_p0 = scmp.ge.s32.totalorder %s35_s29, 2  ;;  %p164_p1 = scmp.ne.s32.totalorder %s2366_s23, %s2362_s22 }
   0x9   : > { %p165_p2 = scmp.eq.s32.totalorder %s1984_s27, 1  ;;  %p170_p3 = scmp.ne.s32.totalorder %s2362_s22, %s2358_s21 }
   0xa   : > { %s3296_s29 = smov (%p37_p0, %s35_s29), 0  ;;  %p171_p5 = scmp.eq.s32.totalorder %s1985_s28, 1 }
   0xb   : > { %p2462_p4 = por %p165_p2, %p164_p1  ;;  %s149_s8 = ssub.s32 %s2374_s25, %s3296_s29 }
   0xc   : > { %p1988_p6 = scmp.ge.s32.totalorder %s2378_s26, 1  ;;  %p152_p7 = scmp.eq.s32.totalorder %s149_s8, 0 }
   0xd   : > { %p2469_p8 = por %p171_p5, %p170_p3  ;;  %p237_p9 = scmp.lt.s32.totalorder %s2378_s26, 3 }
   0xe   : > { %s2475_s10 = scalar_select %p152_p7, %s2366_s23, %s154_s30  }
   0xf   : > { %p238_p10 = pnand %p1988_p6, %p237_p9 }
  0x10   : > { %p272_p11 = scmp.lt.s32.totalorder (!%p238_p10), %s2370_s24, 1  ;;  %v2380_v0 = vmov (!%p238_p10), 0   ;;  %s2381_s16 = smov (!%p238_p10), 126   ;;  %v407_v23 = vld [vmem:[%s3283_s2] sm:$0xff] (!%p238_p10)  ;;  %v408_v24 = vld [vmem:[%s3283_s2 + $0x8] sm:$0xff] (!%p238_p10)  ;;  %v410_v25 = vld [vmem:[%s3283_s2 + $0x18] sm:$0xff] (!%p238_p10) }
  0x11   : > { %241 = sbr.rel (%p238_p10) target bundleno = 824 (0x338), region = 40  ;;  %2183 = vset.pattern.permute.xlu1 (!%p238_p10), %v2380_v0  ;;  %2182 = vset.pattern.permute.xlu0 (!%p238_p10), %v2380_v0  ;;  %s2382_s17 = smov (!%p238_p10), 124   ;;  %v409_v26 = vld [vmem:[%s3283_s2 + $0x10] sm:$0xff] (!%p238_p10)  ;;  %v638_v27 = vld [vmem:[%s3285_s4 + $0x8] sm:$0xff] (!%p238_p10)  ;;  %v637_v28 = vld [vmem:[%s3285_s4] sm:$0xff] (!%p238_p10)  ;;  %vm333_vm0 = vcmask (!%p238_p10), 1031168  }
  0x12   : > { %480 = vmatprep.mubr.bf16.mxu0 (!%p238_p10), %v2380_v0  ;;  %1500 = vmatprep.mubr.bf16.mxu1 (!%p238_p10), %v2380_v0  ;;  %v640_v29 = vld [vmem:[%s3285_s4 + $0x18] sm:$0xff] (!%p238_p10)  ;;  %v639_v30 = vld [vmem:[%s3285_s4 + $0x10] sm:$0xff] (!%p238_p10)  ;;  %v642_v31 = vld [vmem:[%s3285_s4 + $0x28] sm:$0xff] (!%p238_p10)  ;;  %vm374_vm1 = vcmask (!%p238_p10), 1014784   ;;  %vm441_vm2 = vcmask (!%p238_p10), 785408   ;;  %vm1215_vm3 = vcmask (!%p238_p10), 261120  }
  0x13   : > { %v641_v32 = vld [vmem:[%s3285_s4 + $0x20] sm:$0xff] (!%p238_p10)  ;;  %v644_v33 = vld [vmem:[%s3285_s4 + $0x38] sm:$0xff] (!%p238_p10)  ;;  %v643_v34 = vld [vmem:[%s3285_s4 + $0x30] sm:$0xff] (!%p238_p10)  ;;  %s2977_s8 = sand.u32 (!%p238_p10), 1, %s2362_s22   ;;  %s2383_s28 = smov (!%p238_p10), [#allocation2]  }
  0x14   : > { %v646_v35 = vld [vmem:[%s3285_s4 + $0x48] sm:$0xff] (!%p238_p10)  ;;  %v645_v36 = vld [vmem:[%s3285_s4 + $0x40] sm:$0xff] (!%p238_p10)  ;;  %v648_v37 = vld [vmem:[%s3285_s4 + $0x58] sm:$0xff] (!%p238_p10)  ;;  %s1836_s20 = scalar_lea.sflag (!%p238_p10), [#allocation3], %s2977_s8  ;;  %s2272_s30 = sshll.u32 (!%p238_p10), %s2383_s28, 4  ;;  %s2273_s30 = int_to_ptr.vmem [resolvable:$false] %s2272_s30 }
  0x15   : > { %v647_v38 = vld [vmem:[%s3285_s4 + $0x50] sm:$0xff] (!%p238_p10)  ;;  %v650_v39 = vld [vmem:[%s3285_s4 + $0x68] sm:$0xff] (!%p238_p10)  ;;  %v649_v40 = vld [vmem:[%s3285_s4 + $0x60] sm:$0xff] (!%p238_p10) }
  0x16   : > { %v652_v41 = vld [vmem:[%s3285_s4 + $0x78] sm:$0xff] (!%p238_p10)  ;;  %v651_v42 = vld [vmem:[%s3285_s4 + $0x70] sm:$0xff] (!%p238_p10)  ;;  %v654_v43 = vld [vmem:[%s3285_s4 + $0x88] sm:$0xff] (!%p238_p10) }
  0x17   : > { %v653_v44 = vld [vmem:[%s3285_s4 + $0x80] sm:$0xff] (!%p238_p10)  ;;  %v656_v45 = vld [vmem:[%s3285_s4 + $0x98] sm:$0xff] (!%p238_p10)  ;;  %v655_v46 = vld [vmem:[%s3285_s4 + $0x90] sm:$0xff] (!%p238_p10) }
  0x18   : > { %s273_s11 = scalar_select %p272_p11, %s2370_s24, 1  ;;  %v658_v47 = vld [vmem:[%s3285_s4 + $0xa8] sm:$0xff]  ;;  %v657_v48 = vld [vmem:[%s3285_s4 + $0xa0] sm:$0xff]  ;;  %v660_v49 = vld [vmem:[%s3285_s4 + $0xb8] sm:$0xff] }
  0x19   : > { %v659_v50 = vld [vmem:[%s3285_s4 + $0xb0] sm:$0xff]  ;;  %v662_v51 = vld [vmem:[%s3285_s4 + $0xc8] sm:$0xff]  ;;  %v661_v52 = vld [vmem:[%s3285_s4 + $0xc0] sm:$0xff] }
  0x1a   : > { %s2086_s12 = smul.u32 96, %s273_s11  ;;  %v664_v53 = vld [vmem:[%s3285_s4 + $0xd8] sm:$0xff]  ;;  %v663_v54 = vld [vmem:[%s3285_s4 + $0xd0] sm:$0xff]  ;;  %v666_v55 = vld [vmem:[%s3285_s4 + $0xe8] sm:$0xff]  ;;  %s1990_s11 = sshll.u32 %s2977_s8, 10 }
  0x1b   : > { %v665_v56 = vld [vmem:[%s3285_s4 + $0xe0] sm:$0xff]  ;;  %v668_v57 = vld [vmem:[%s3285_s4 + $0xf8] sm:$0xff]  ;;  %v667_v58 = vld [vmem:[%s3285_s4 + $0xf0] sm:$0xff]  ;;  %s2982_s13 = scalar_lea.vmem [#allocation4], %s1990_s11  ;;  %s2274_s11 = scalar_lea.vmem %s2273_s30, 2048 }
  0x1c   : > { %s276_s15 = scalar_lea.vmem %s3281_s0, %s2086_s12  ;;  %v670_v59 = vld [vmem:[%s3285_s4 + $0x108] sm:$0xff]  ;;  %v669_v60 = vld [vmem:[%s3285_s4 + $0x100] sm:$0xff]  ;;  %v672_v61 = vld [vmem:[%s3285_s4 + $0x118] sm:$0xff]  ;;  %s1989_s12 = sshll.u32 %s2977_s8, 6 }
  0x1d   : > { %v286_v1 = vld [vmem:[%s276_s15 + $0x8] sm:$0xff]  ;;  %v287_v2 = vld [vmem:[%s276_s15 + $0x10] sm:$0xff]  ;;  %v285_v3 = vld [vmem:[%s276_s15] sm:$0xff]  ;;  %s2989_s14 = scalar_lea.vmem [#allocation2], %s1989_s12 }
  0x1e   : > { %v2152_v4 = vpack.i.bf16 %v287_v2, %v286_v1  ;;  %v288_v5 = vld [vmem:[%s276_s15 + $0x18] sm:$0xff]  ;;  %v289_v6 = vld [vmem:[%s276_s15 + $0x20] sm:$0xff]  ;;  %v290_v7 = vld [vmem:[%s276_s15 + $0x28] sm:$0xff] }
  0x1f   : > { %v2162_v8 = vpack.i.bf16 %v288_v5, %v285_v3  ;;  %v292_v9 = vld [vmem:[%s276_s15 + $0x38] sm:$0xff]  ;;  %v293_v10 = vld [vmem:[%s276_s15 + $0x40] sm:$0xff]  ;;  %v295_v11 = vld [vmem:[%s276_s15 + $0x50] sm:$0xff]  ;;  %v392_v12 = vpack.c.bf16 %v289_v6, %v286_v1  ;;  %v391_v13 = vpack.c.bf16 %v288_v5, %v285_v3  ;;  %v2157_v14 = vpack.i.bf16 %v290_v7, %v289_v6 }
  0x20   : > { %2153 = vrot.lane.b32.xlu0 %v2152_v4, %s2381_s16  ;;  %v296_v15 = vld [vmem:[%s276_s15 + $0x58] sm:$0xff]  ;;  %v394_v16 = vpack.c.bf16 %v295_v11, %v292_v9  ;;  %v2167_v17 = vpack.i.bf16 %v293_v10, %v292_v9  ;;  %v291_v18 = vld [vmem:[%s276_s15 + $0x30] sm:$0xff]  ;;  %v294_v19 = vld [vmem:[%s276_s15 + $0x48] sm:$0xff]  ;;  %s2080_s15 = sshll.u32 %s2370_s24, 10 }
  0x21   : > { %2163 = vrot.lane.b32.xlu1 %v2162_v8, %s2381_s16  ;;  %448 = vmatprep.subr.bf16.mxu0 %v392_v12  ;;  %v393_v20 = vpack.c.bf16 %v294_v19, %v291_v18  ;;  %v2172_v21 = vpack.i.bf16 %v296_v15, %v295_v11  ;;  %v2177_v22 = vpack.i.bf16 %v294_v19, %v291_v18  ;;  %v671_v62 = vld [vmem:[%s3285_s4 + $0x110] sm:$0xff]  ;;  %v674_v63 = vld [vmem:[%s3285_s4 + $0x128] sm:$0xff]  ;;  %s3032_s19 = scalar_lea.hbm %s3286_s5, %s2080_s15 }
  0x22   : > { %449 = vmatpush1.bf16.msra.mxu0 %v391_v13 }
  0x23   : > { %450 = vmatprep.subr.bf16.mxu0 %v394_v16 }
  0x24   : > { %2158 = vrot.lane.b32.xlu0 %v2157_v14, %s2381_s16 }
  0x25   : > { %2168 = vrot.lane.b32.xlu1 %v2167_v17, %s2381_s16 }
  0x26   : > { %451 = vmatpush1.bf16.msra.mxu0 %v393_v20  ;;  %v678_v20 = vld [vmem:[%s3285_s4 + $0x148] sm:$0xff] }
  0x28   : > { %2173 = vrot.lane.b32.xlu0 %v2172_v21, %s2381_s16 }
  0x29   : > { %2178 = vrot.lane.b32.xlu1 %v2177_v22, %s2381_s16  ;;  %s1856_s16 = sshll.u32 %s2989_s14, 4  ;;  %s3034_s16 = int_to_ptr.vmem [resolvable:$true] %s1856_s16 }
  0x2a   : > { %s2268_s27 = scalar_lea.vmem %s3034_s16, 1024  ;;  %p2275_p1 = scmp.lt.s32.totalorder %s3034_s16, %s2273_s30 }
  0x2b   : > { %p2269_p12 = scmp.ne.s32.totalorder %s3034_s16, %s2268_s27  ;;  %p2276_p2 = scmp.lt.s32.totalorder %s2274_s11, %s2268_s27 }
  0x2c   : > { %352 = vrot.lane.b32.xlu0 %v286_v1, %s2382_s17 }
  0x2d   : > { %354 = vrot.lane.b32.xlu1 %v287_v2, %s2382_s17  ;;  %v673_v2 = vld [vmem:[%s3285_s4 + $0x120] sm:$0xff]  ;;  %p2270_p13 = pnand %p2269_p12, %p2462_p4  ;;  %p2277_p3 = por %p2276_p2, %p2275_p1 }
  0x2f   : > { %p2271_p0 = pneg %p2270_p13 }
  0x30   : > { %358 = vrot.lane.b32.xlu0 %v289_v6, %s2382_s17 }
  0x31   : > { %360 = vrot.lane.b32.xlu1 %v290_v7, %s2382_s17  ;;  %v676_v7 = vld [vmem:[%s3285_s4 + $0x138] sm:$0xff]  ;;  %p2278_p5 = pnand %p2277_p3, %p2271_p0 }
  0x34   : > { %350 = vrot.lane.b32.xlu0 %v285_v3, %s2382_s17 }
  0x35   : > { %356 = vrot.lane.b32.xlu1 %v288_v5, %s2382_s17 }
  0x38   : > { %364 = vrot.lane.b32.xlu0 %v292_v9, %s2382_s17  ;;  %v675_v9 = vld [vmem:[%s3285_s4 + $0x130] sm:$0xff] }
  0x39   : > { %366 = vrot.lane.b32.xlu1 %v293_v10, %s2382_s17 }
  0x3c   : > { %370 = vrot.lane.b32.xlu0 %v295_v11, %s2382_s17 }
  0x3d   : > { %372 = vrot.lane.b32.xlu1 %v296_v15, %s2382_s17 }
  0x40   : > { %362 = vrot.lane.b32.xlu0 %v291_v18, %s2382_s17 }
  0x41   : > { %368 = vrot.lane.b32.xlu1 %v294_v19, %s2382_s17 }
  0x44   : > { %413 = vperm.xlu0 %2182, %v407_v23  }
  0x45   : > { %418 = vperm.xlu1 %2183, %v408_v24   ;;  %v677_v24 = vld [vmem:[%s3285_s4 + $0x140] sm:$0xff] }
  0x48   : > { %428 = vperm.xlu0 %2182, %v410_v25  }
  0x49   : > { %423 = vperm.xlu1 %2183, %v409_v26  }
  0x4c   : > { %712 = vperm.xlu0 %2182, %v638_v27  }
  0x4d   : > { %707 = vperm.xlu1 %2183, %v637_v28  }
  0x50   : > { %722 = vperm.xlu0 %2182, %v640_v29  }
  0x51   : > { %717 = vperm.xlu1 %2183, %v639_v30  }
  0x54   : > { %732 = vperm.xlu0 %2182, %v642_v31  }
  0x55   : > { %727 = vperm.xlu1 %2183, %v641_v32   ;;  %v680_v32 = vld [vmem:[%s3285_s4 + $0x158] sm:$0xff] }
  0x58   : > { %742 = vperm.xlu0 %2182, %v644_v33  }
  0x59   : > { %737 = vperm.xlu1 %2183, %v643_v34  }
  0x5c   : > { %752 = vperm.xlu0 %2182, %v646_v35  }
  0x5d   : > { %747 = vperm.xlu1 %2183, %v645_v36  }
  0x60   : > { %762 = vperm.xlu0 %2182, %v648_v37   ;;  %v679_v37 = vld [vmem:[%s3285_s4 + $0x150] sm:$0xff] }
  0x61   : > { %757 = vperm.xlu1 %2183, %v647_v38  }
  0x64   : > { %772 = vperm.xlu0 %2182, %v650_v39  }
  0x65   : > { %767 = vperm.xlu1 %2183, %v649_v40   ;;  %v682_v40 = vld [vmem:[%s3285_s4 + $0x168] sm:$0xff] }
  0x68   : > { %782 = vperm.xlu0 %2182, %v652_v41  }
  0x69   : > { %777 = vperm.xlu1 %2183, %v651_v42   ;;  %v681_v42 = vld [vmem:[%s3285_s4 + $0x160] sm:$0xff] }
  0x6c   : > { %792 = vperm.xlu0 %2182, %v654_v43  }
  0x6d   : > { %787 = vperm.xlu1 %2183, %v653_v44  }
  0x70   : > { %802 = vperm.xlu0 %2182, %v656_v45  }
  0x71   : > { %797 = vperm.xlu1 %2183, %v655_v46  }
  0x74   : > { %812 = vperm.xlu0 %2182, %v658_v47   ;;  %v684_v47 = vld [vmem:[%s3285_s4 + $0x178] sm:$0xff] }
  0x75   : > { %807 = vperm.xlu1 %2183, %v657_v48  }
  0x78   : > { %822 = vperm.xlu0 %2182, %v660_v49   ;;  %v683_v49 = vld [vmem:[%s3285_s4 + $0x170] sm:$0xff] }
  0x79   : > { %817 = vperm.xlu1 %2183, %v659_v50  }
  0x7c   : > { %832 = vperm.xlu0 %2182, %v662_v51  }
  0x7d   : > { %827 = vperm.xlu1 %2183, %v661_v52  }
  0x80   : > { %842 = vperm.xlu0 %2182, %v664_v53  }
  0x81   : > { %837 = vperm.xlu1 %2183, %v663_v54   ;;  %v686_v54 = vld [vmem:[%s3285_s4 + $0x188] sm:$0xff] }
  0x84   : > { %852 = vperm.xlu0 %2182, %v666_v55  }
  0x85   : > { %847 = vperm.xlu1 %2183, %v665_v56   ;;  %v685_v56 = vld [vmem:[%s3285_s4 + $0x180] sm:$0xff] }
  0x88   : > { %862 = vperm.xlu0 %2182, %v668_v57  }
  0x89   : > { %857 = vperm.xlu1 %2183, %v667_v58   ;;  %v688_v58 = vld [vmem:[%s3285_s4 + $0x198] sm:$0xff] }
  0x8c   : > { %872 = vperm.xlu0 %2182, %v670_v59  }
  0x8d   : > { %867 = vperm.xlu1 %2183, %v669_v60   ;;  %v687_v60 = vld [vmem:[%s3285_s4 + $0x190] sm:$0xff] }
  0x90   : > { %882 = vperm.xlu0 %2182, %v672_v61  }
  0x91   : > { %877 = vperm.xlu1 %2183, %v671_v62  }
  0x92   : > { %v2154_v1 = vpop.permute.xlu0 %2153 }
  0x93   : > { %v2164_v3 = vpop.permute.xlu1 %2163  ;;  %v2156_v4 = vunpack.i.h.bf16 %v2154_v1  ;;  %v2155_v5 = vunpack.i.l.bf16 %v2154_v1 }
  0x94   : > { %v2165_v6 = vunpack.i.l.bf16 %v2164_v3  ;;  %892 = vperm.xlu0 %2182, %v674_v63   ;;  %v2166_v10 = vunpack.i.h.bf16 %v2164_v3 }
  0x95   : > { %887 = vperm.xlu1 %2183, %v673_v2   ;;  %v335_v14 = vsel %vm333_vm0, %v2155_v5, %v2156_v4  ;;  %v690_v2 = vld [vmem:[%s3285_s4 + $0x1a8] sm:$0xff]  ;;  %v689_v4 = vld [vmem:[%s3285_s4 + $0x1a0] sm:$0xff] }
  0x96   : > { %v2159_v8 = vpop.permute.xlu0 %2158  ;;  %v334_v15 = vsel %vm333_vm0, %v2165_v6, %v2155_v5 }
  0x97   : > { %v2161_v11 = vunpack.i.h.bf16 %v2159_v8  ;;  %v2160_v12 = vunpack.i.l.bf16 %v2159_v8  ;;  %v2169_v13 = vpop.permute.xlu1 %2168 }
  0x98   : > { %902 = vperm.xlu0 %2182, %v676_v7   ;;  %v2171_v16 = vunpack.i.h.bf16 %v2169_v13  ;;  %v2170_v17 = vunpack.i.l.bf16 %v2169_v13  ;;  %v693_v13 = vld [vmem:[%s3285_s4 + $0x1c0] sm:$0xff] }
  0x99   : > { %v337_v18 = vsel %vm333_vm0, %v2160_v12, %v2161_v11  ;;  %v336_v19 = vsel %vm333_vm0, %v2166_v10, %v2160_v12  ;;  %897 = vperm.xlu1 %2183, %v675_v9   ;;  %v692_v9 = vld [vmem:[%s3285_s4 + $0x1b8] sm:$0xff]  ;;  %v2184_v10 = vld [vmem:[%s3282_s1] sm:$0xff]   ;;  %v691_v11 = vld [vmem:[%s3285_s4 + $0x1b0] sm:$0xff] }
  0x9a   : > { %v2174_v21 = vpop.permute.xlu0 %2173  ;;  %v396_v22 = vpack.c.bf16 %v337_v18, %v335_v14  ;;  %v395_v23 = vpack.c.bf16 %v336_v19, %v334_v15  ;;  %v339_v30 = vsel %vm333_vm0, %v2170_v17, %v2171_v16  ;;  %v694_v12 = vld [vmem:[%s3285_s4 + $0x1c8] sm:$0xff]  ;;  %v696_v14 = vld [vmem:[%s3285_s4 + $0x1d8] sm:$0xff]  ;;  %v695_v16 = vld [vmem:[%s3285_s4 + $0x1d0] sm:$0xff] }
  0x9b   : > { %v2176_v25 = vunpack.i.h.bf16 %v2174_v21  ;;  %v2175_v26 = vunpack.i.l.bf16 %v2174_v21  ;;  %v2179_v27 = vpop.permute.xlu1 %2178  ;;  %v2185_v15 = vld [vmem:[%s3282_s1 + $0x8] sm:$0xff]   ;;  %v697_v18 = vld [vmem:[%s3285_s4 + $0x1e0] sm:$0xff]  ;;  %v700_v19 = vld [vmem:[%s3285_s4 + $0x1f8] sm:$0xff] }
  0x9c   : > { %v2181_v28 = vunpack.i.h.bf16 %v2179_v27  ;;  %v2180_v29 = vunpack.i.l.bf16 %v2179_v27  ;;  %452 = vmatprep.subr.bf16.mxu0 %v396_v22  ;;  %912 = vperm.xlu0 %2182, %v678_v20   ;;  %v699_v20 = vld [vmem:[%s3285_s4 + $0x1f0] sm:$0xff]  ;;  %v702_v21 = vld [vmem:[%s3285_s4 + $0x208] sm:$0xff]  ;;  %v701_v22 = vld [vmem:[%s3285_s4 + $0x200] sm:$0xff] }
  0x9d   : > { %453 = vmatpush1.bf16.msra.mxu0 %v395_v23  ;;  %v341_v31 = vsel %vm333_vm0, %v2175_v26, %v2176_v25  ;;  %907 = vperm.xlu1 %2183, %v677_v24   ;;  %v704_v23 = vld [vmem:[%s3285_s4 + $0x218] sm:$0xff]  ;;  %v703_v24 = vld [vmem:[%s3285_s4 + $0x210] sm:$0xff] }
  0x9e   : > { %v353_v33 = vpop.permute.xlu0 %352  ;;  %v398_v34 = vpack.c.bf16 %v341_v31, %v339_v30  ;;  %v338_v35 = vsel %vm333_vm0, %v2180_v29, %v2170_v17  ;;  %v340_v36 = vsel %vm333_vm0, %v2181_v28, %v2175_v26  ;;  %v698_v17 = vld [vmem:[%s3285_s4 + $0x1e8] sm:$0xff] }
  0x9f   : > { %v355_v38 = vpop.permute.xlu1 %354  ;;  %v397_v39 = vpack.c.bf16 %v340_v36, %v338_v35 }
  0xa0   : > { %454 = vmatprep.subr.bf16.mxu0 %v398_v34  ;;  %922 = vperm.xlu0 %2182, %v680_v32   ;;  %v2645_v44 = vsel %vm374_vm1, %v353_v33, %v355_v38 }
  0xa1   : > { %455 = vmatpush1.bf16.msra.mxu0 %v397_v39  ;;  %917 = vperm.xlu1 %2183, %v679_v37  }
  0xa2   : > { %v359_v41 = vpop.permute.xlu0 %358 }
  0xa3   : > { %v361_v43 = vpop.permute.xlu1 %360 }
  0xa4   : > { %v2648_v45 = vsel %vm374_vm1, %v359_v41, %v361_v43  ;;  %932 = vperm.xlu0 %2182, %v682_v40  }
  0xa5   : > { %v400_v46 = vpack.c.bf16 %v2648_v45, %v2645_v44  ;;  %927 = vperm.xlu1 %2183, %v681_v42  }
  0xa6   : > { %v351_v48 = vpop.permute.xlu0 %350 }
  0xa7   : > { %v2659_v50 = vsel %vm374_vm1, %v351_v48, %v353_v33  ;;  %v357_v51 = vpop.permute.xlu1 %356  ;;  %456 = vmatprep.subr.bf16.mxu0 %v400_v46 }
  0xa8   : > { %v2662_v52 = vsel %vm374_vm1, %v357_v51, %v359_v41  ;;  %942 = vperm.xlu0 %2182, %v684_v47  }
  0xa9   : > { %v399_v53 = vpack.c.bf16 %v2662_v52, %v2659_v50  ;;  %937 = vperm.xlu1 %2183, %v683_v49  }
  0xaa   : > { %v365_v55 = vpop.permute.xlu0 %364 }
  0xab   : > { %v367_v57 = vpop.permute.xlu1 %366  ;;  %457 = vmatpush1.bf16.msra.mxu0 %v399_v53 }
  0xac   : > { %952 = vperm.xlu0 %2182, %v686_v54   ;;  %v2679_v62 = vsel %vm374_vm1, %v365_v55, %v367_v57 }
  0xad   : > { %947 = vperm.xlu1 %2183, %v685_v56  }
  0xae   : > { %v371_v59 = vpop.permute.xlu0 %370 }
  0xaf   : > { %v373_v61 = vpop.permute.xlu1 %372 }
  0xb0   : > { %v2682_v63 = vsel %vm374_vm1, %v371_v59, %v373_v61  ;;  %962 = vperm.xlu0 %2182, %v688_v58  }
  0xb1   : > { %v402_v1 = vpack.c.bf16 %v2682_v63, %v2679_v62  ;;  %957 = vperm.xlu1 %2183, %v687_v60  }
  0xb2   : > { %v363_v3 = vpop.permute.xlu0 %362 }
  0xb3   : > { %v2693_v5 = vsel %vm374_vm1, %v363_v3, %v365_v55  ;;  %v369_v6 = vpop.permute.xlu1 %368  ;;  %458 = vmatprep.subr.bf16.mxu0 %v402_v1 }
  0xb4   : > { %v2696_v7 = vsel %vm374_vm1, %v369_v6, %v371_v59  ;;  %972 = vperm.xlu0 %2182, %v690_v2  }
  0xb5   : > { %v401_v8 = vpack.c.bf16 %v2696_v7, %v2693_v5  ;;  %967 = vperm.xlu1 %2183, %v689_v4  }
  0xb7   : > { %459 = vmatpush1.bf16.msra.mxu0 %v401_v8 }
  0xb8   : > { %982 = vperm.xlu0 %2182, %v692_v9  }
  0xb9   : > { %977 = vperm.xlu1 %2183, %v691_v11  }
  0xba   : > { %1994 = vmatmul.mubr.msk.bf16.vlgmr.msra.gmra.mrb[0].mxu0 %vm441_vm2, %v2184_v10 }
  0xbb   : > { %490 = vmatprep.mubr.bf16.mxu0 %v2380_v0 }
  0xbc   : > { %992 = vperm.xlu0 %2182, %v694_v12  }
  0xbd   : > { %987 = vperm.xlu1 %2183, %v693_v13  }
  0xc0   : > { %1002 = vperm.xlu0 %2182, %v696_v14  }
  0xc1   : > { %997 = vperm.xlu1 %2183, %v695_v16  }
  0xc2   : > { %1995 = vmatmul.mubr.msk.bf16.gmra.mrb[4].mxu0 %vm441_vm2, %v2185_v15 }
  0xc3   : > { %1350 = vmatprep.mubr.bf16.mxu0 %v2380_v0  ;;  %v414_v25 = vpop.permute.xlu0 %413 }
  0xc4   : > { %1012 = vperm.xlu0 %2182, %v698_v17   ;;  %v419_v29 = vpop.permute.xlu1 %418 }
  0xc5   : > { %1007 = vperm.xlu1 %2183, %v697_v18  }
  0xc7   : > { %v429_v43 = vpop.permute.xlu0 %428 }
  0xc8   : > { %1022 = vperm.xlu0 %2182, %v700_v19   ;;  %v424_v39 = vpop.permute.xlu1 %423 }
  0xc9   : > { %1017 = vperm.xlu1 %2183, %v699_v20  }
  0xcc   : > { %1032 = vperm.xlu0 %2182, %v702_v21  }
  0xcd   : > { %1027 = vperm.xlu1 %2183, %v701_v22  }
  0xd0   : > { %1042 = vperm.xlu0 %2182, %v704_v23  }
  0xd1   : > { %1037 = vperm.xlu1 %2183, %v703_v24  }
 0x18d   : > { %v482_v26 = vpop.f32.mrb[0].mxu0 }
 0x18e   : > { %v483_v27 = vadd.f32 %v482_v26, %v414_v25  ;;  %v484_v28 = vpop.f32.mrb[1].mxu0 }
 0x18f   : > { %v485_v30 = vadd.f32 %v484_v28, %v414_v25  ;;  %v486_v31 = vpop.f32.mrb[2].mxu0 }
 0x190   : > { %v1996_v32 = vmul.f32 -1.442695, %v483_v27  ;;  %v487_v33 = vadd.f32 %v486_v31, %v419_v29  ;;  %v488_v34 = vpop.f32.mrb[3].mxu0 }
 0x191   : > { %v1997_v35 = vmul.f32 -1.442695, %v485_v30  ;;  %v489_v36 = vadd.f32 %v488_v34, %v419_v29 }
 0x192   : > { %2220 = vpow2.f32 %v1996_v32  ;;  %v1998_v37 = vmul.f32 -1.442695, %v487_v33 }
 0x193   : > { %2222 = vpow2.f32 %v1997_v35  ;;  %v1999_v38 = vmul.f32 -1.442695, %v489_v36 }
 0x194   : > { %2224 = vpow2.f32 %v1998_v37 }
 0x195   : > { %v492_v40 = vpop.f32.mrb[4].mxu0  ;;  %2226 = vpow2.f32 %v1999_v38 }
 0x196   : > { %v493_v41 = vadd.f32 %v492_v40, %v424_v39  ;;  %v494_v42 = vpop.f32.mrb[5].mxu0  ;;  %2228 = vtanh.f32 %v483_v27 }
 0x197   : > { %v495_v46 = vadd.f32 %v494_v42, %v424_v39  ;;  %v496_v47 = vpop.f32.mrb[6].mxu0  ;;  %v2186_v42 = vld [vmem:[%s3284_s3] sm:$0xff]  }
 0x198   : > { %v2000_v48 = vmul.f32 -1.442695, %v493_v41  ;;  %v497_v49 = vadd.f32 %v496_v47, %v429_v43  ;;  %v498_v51 = vpop.f32.mrb[7].mxu0  ;;  %v2189_v47 = vld [vmem:[%s3284_s3 + $0x80] sm:$0xff]  }
 0x199   : > { %v2001_v53 = vmul.f32 -1.442695, %v495_v46  ;;  %v499_v54 = vadd.f32 %v498_v51, %v429_v43  ;;  %v2187_v43 = vld [vmem:[%s3284_s3 + $0x78] sm:$0xff]  }
 0x19a   : > { %2230 = vpow2.f32 %v2000_v48  ;;  %v2002_v55 = vmul.f32 -1.442695, %v497_v49  ;;  %v2190_v48 = vld [vmem:[%s3284_s3 + $0x10] sm:$0xff]   ;;  %v2192_v51 = vld [vmem:[%s3284_s3 + $0x18] sm:$0xff]  }
 0x19b   : > { %2232 = vpow2.f32 %v2001_v53  ;;  %v2003_v59 = vmul.f32 -1.442695, %v499_v54  ;;  %v2193_v53 = vld [vmem:[%s3284_s3 + $0x90] sm:$0xff]  }
 0x19c   : > { %v2221_v56 = vpop.eup %2220  ;;  %2234 = vtanh.f32 %v485_v30 }
 0x19d   : > { %v2223_v57 = vpop.eup %2222  ;;  %v533_v58 = vadd.f32 1.0, %v2221_v56  ;;  %2236 = vpow2.f32 %v2002_v55  ;;  %v2195_v55 = vld [vmem:[%s3284_s3 + $0x98] sm:$0xff]   ;;  %v2196_v56 = vld [vmem:[%s3284_s3 + $0x28] sm:$0xff]  }
 0x19e   : > { %v534_v60 = vadd.f32 1.0, %v2223_v57  ;;  %2238 = vtanh.f32 %v487_v33  ;;  %v2225_v61 = vpop.eup %2224  ;;  %v2197_v57 = vld [vmem:[%s3284_s3 + $0xa0] sm:$0xff]  }
 0x19f   : > { %2240 = vrcp.f32 %v533_v58  ;;  %v535_v1 = vadd.f32 1.0, %v2225_v61  ;;  %v2227_v2 = vpop.eup %2226  ;;  %v2198_v58 = vld [vmem:[%s3284_s3 + $0x30] sm:$0xff]  }
 0x1a0   : > { %2242 = vrcp.f32 %v534_v60  ;;  %v536_v3 = vadd.f32 1.0, %v2227_v2  ;;  %v2229_v4 = vpop.eup %2228  ;;  %v2200_v60 = vld [vmem:[%s3284_s3 + $0x38] sm:$0xff]   ;;  %v2201_v61 = vld [vmem:[%s3284_s3 + $0xb0] sm:$0xff]  }
 0x1a1   : > { %2244 = vpow2.f32 %v2003_v59  ;;  %v2199_v59 = vld [vmem:[%s3284_s3 + $0xa8] sm:$0xff]   ;;  %v2203_v2 = vld [vmem:[%s3284_s3 + $0xb8] sm:$0xff]  }
 0x1a2   : > { %2246 = vrcp.f32 %v535_v1  ;;  %v2202_v1 = vld [vmem:[%s3284_s3 + $0x40] sm:$0xff]  }
 0x1a3   : > { %2248 = vtanh.f32 %v489_v36 }
 0x1a4   : > { %v2231_v6 = vpop.eup %2230  ;;  %2250 = vrcp.f32 %v536_v3  ;;  %v2204_v3 = vld [vmem:[%s3284_s3 + $0x48] sm:$0xff]  }
 0x1a5   : > { %v2233_v8 = vpop.eup %2232  ;;  %v537_v9 = vadd.f32 1.0, %v2231_v6  ;;  %2252 = vtanh.f32 %v493_v41  ;;  %v2206_v6 = vld [vmem:[%s3284_s3 + $0x50] sm:$0xff]  }
 0x1a6   : > { %v2235_v10 = vpop.eup %2234  ;;  %v538_v13 = vadd.f32 1.0, %v2233_v8  ;;  %v2207_v8 = vld [vmem:[%s3284_s3 + $0xc8] sm:$0xff]  }
 0x1a7   : > { %v2237_v11 = vpop.eup %2236  ;;  %2254 = vrcp.f32 %v537_v9  ;;  %v2208_v9 = vld [vmem:[%s3284_s3 + $0x58] sm:$0xff]  }
 0x1a8   : > { %v2239_v12 = vpop.eup %2238  ;;  %v539_v14 = vadd.f32 1.0, %v2237_v11  ;;  %2256 = vtanh.f32 %v497_v49  ;;  %v2191_v49 = vld [vmem:[%s3284_s3 + $0x88] sm:$0xff]   ;;  %v2210_v11 = vld [vmem:[%s3284_s3 + $0x60] sm:$0xff]  }
 0x1a9   : > { %v2241_v15 = vpop.eup %2240 }
 0x1aa   : > { %v2243_v16 = vpop.eup %2242  ;;  %2258 = vrcp.f32 %v539_v14  ;;  %v557_v21 = vmul.f32 %v2241_v15, %v2229_v4  ;;  %v2205_v4 = vld [vmem:[%s3284_s3 + $0xc0] sm:$0xff]   ;;  %v2214_v15 = vld [vmem:[%s3284_s3 + $0x70] sm:$0xff]  }
 0x1ab   : > { %v2245_v17 = vpop.eup %2244  ;;  %2260 = vtanh.f32 %v495_v46  ;;  %v558_v24 = vmul.f32 %v2243_v16, %v2235_v10  ;;  %v2188_v46 = vld [vmem:[%s3284_s3 + $0x8] sm:$0xff]   ;;  %v2209_v10 = vld [vmem:[%s3284_s3 + $0xd0] sm:$0xff]   ;;  %v2213_v14 = vld [vmem:[%s3284_s3 + $0xe0] sm:$0xff]  }
 0x1ac   : > { %v2247_v18 = vpop.eup %2246  ;;  %2262 = vrcp.f32 %v538_v13  ;;  %v540_v19 = vadd.f32 1.0, %v2245_v17  ;;  %v2212_v13 = vld [vmem:[%s3284_s3 + $0x68] sm:$0xff]   ;;  %v2216_v17 = vld [vmem:[%s3284_s3 + $0xf0] sm:$0xff]  }
 0x1ad   : > { %v2249_v20 = vpop.eup %2248  ;;  %2264 = vtanh.f32 %v499_v54  ;;  %v559_v22 = vmul.f32 %v2247_v18, %v2239_v12  ;;  %v2194_v54 = vld [vmem:[%s3284_s3 + $0x20] sm:$0xff]   ;;  %v2211_v12 = vld [vmem:[%s3284_s3 + $0xd8] sm:$0xff]   ;;  %v2215_v16 = vld [vmem:[%s3284_s3 + $0xe8] sm:$0xff]   ;;  %v2902_v18 = vpop.permute.xlu0 %712 }
 0x1ae   : > { %v2251_v23 = vpop.eup %2250  ;;  %2266 = vrcp.f32 %v540_v19  ;;  %v708_v19 = vpop.permute.xlu1 %707 }
 0x1af   : > { %v560_v25 = vmul.f32 %v2251_v23, %v2249_v20  ;;  %v633_v26 = vpack.c.bf16 %v559_v22, %v557_v21  ;;  %v2253_v27 = vpop.eup %2252  ;;  %v2217_v20 = vld [vmem:[%s3284_s3 + $0xf8] sm:$0xff]  }
 0x1b1   : > { %v634_v28 = vpack.c.bf16 %v560_v25, %v558_v24  ;;  %v2255_v29 = vpop.eup %2254  ;;  %v2909_v21 = vpop.permute.xlu0 %722  ;;  %v2218_v25 = vld [vmem:[%s3284_s3 + $0x100] sm:$0xff]  }
 0x1b2   : > { %v2257_v30 = vpop.eup %2256  ;;  %v561_v33 = vmul.f32 %v2255_v29, %v2253_v27  ;;  %v2911_v22 = vpop.permute.xlu1 %717 }
 0x1b3   : > { %1318 = vmatprep.subr.bf16.mxu0 %v634_v28  ;;  %2082 = vmatprep.subr.bf16.mxu1 %v634_v28  ;;  %v2219_v28 = vld [vmem:[%s3284_s3 + $0x108] sm:$0xff]  }
 0x1b4   : > { %v2259_v31 = vpop.eup %2258  ;;  %1319 = vmatpush1.bf16.msra.mxu0 %v633_v26  ;;  %2084 = vmatpush1.bf16.msra.mxu1 %v633_v26 }
 0x1b5   : > { %v2261_v32 = vpop.eup %2260  ;;  %v563_v34 = vmul.f32 %v2259_v31, %v2257_v30  ;;  %v2915_v23 = vpop.permute.xlu0 %732 }
 0x1b6   : > { %v2263_v35 = vpop.eup %2262  ;;  %v2917_v24 = vpop.permute.xlu1 %727 }
 0x1b7   : > { %v2265_v36 = vpop.eup %2264  ;;  %v635_v37 = vpack.c.bf16 %v563_v34, %v561_v33  ;;  %v562_v39 = vmul.f32 %v2263_v35, %v2261_v32 }
 0x1b8   : > { %v2267_v38 = vpop.eup %2266 }
 0x1b9   : > { %v564_v40 = vmul.f32 %v2267_v38, %v2265_v36  ;;  %v2924_v26 = vpop.permute.xlu0 %742 }
 0x1ba   : > { %v2926_v27 = vpop.permute.xlu1 %737 }
 0x1bb   : > { %v636_v41 = vpack.c.bf16 %v564_v40, %v562_v39 }
 0x1bd   : > { %1320 = vmatprep.subr.bf16.mxu0 %v636_v41  ;;  %2083 = vmatprep.subr.bf16.mxu1 %v636_v41  ;;  %v2931_v29 = vpop.permute.xlu0 %752 }
 0x1be   : > { %1321 = vmatpush1.bf16.msra.mxu0 %v635_v37  ;;  %2085 = vmatpush1.bf16.msra.mxu1 %v635_v37  ;;  %v2933_v30 = vpop.permute.xlu1 %747 }
 0x1c1   : > { %2038 = vmatmul.mubr.msk.bf16.vlgmr.msra.gmra.mrb[8].mxu0 %vm1215_vm3, %v2186_v42  ;;  %2053 = vmatmul.mubr.msk.bf16.vlgmr.msra.gmra.mrb[0].mxu1 %vm1215_vm3, %v2187_v43  ;;  %v2936_v31 = vpop.permute.xlu0 %762 }
 0x1c2   : > { %1360 = vmatprep.mubr.bf16.mxu0 %v2380_v0  ;;  %1510 = vmatprep.mubr.bf16.mxu1 %v2380_v0  ;;  %v2938_v32 = vpop.permute.xlu1 %757 }
 0x1c5   : > { %v2940_v33 = vpop.permute.xlu0 %772 }
 0x1c9   : > { %2039 = vmatmul.mubr.msk.bf16.gmra.mrb[12].mxu0 %vm1215_vm3, %v2188_v46  ;;  %2054 = vmatmul.mubr.msk.bf16.gmra.mrb[4].mxu1 %vm1215_vm3, %v2189_v47  ;;  %v2944_v34 = vpop.permute.xlu0 %782 }
 0x1ca   : > { %1370 = vmatprep.mubr.bf16.mxu0 %v2380_v0  ;;  %1520 = vmatprep.mubr.bf16.mxu1 %v2380_v0 }
 0x1cd   : > { %v2948_v36 = vpop.permute.xlu0 %792 }
 0x1d1   : > { %2040 = vmatmul.mubr.msk.bf16.gmra.mrb[16].mxu0 %vm1215_vm3, %v2190_v48  ;;  %2055 = vmatmul.mubr.msk.bf16.gmra.mrb[8].mxu1 %vm1215_vm3, %v2191_v49  ;;  %v2952_v38 = vpop.permute.xlu0 %802 }
 0x1d2   : > { %1380 = vmatprep.mubr.bf16.mxu0 %v2380_v0  ;;  %1530 = vmatprep.mubr.bf16.mxu1 %v2380_v0 }
 0x1d5   : > { %v2956_v40 = vpop.permute.xlu0 %812 }
 0x1d9   : > { %2041 = vmatmul.mubr.msk.bf16.gmra.mrb[20].mxu0 %vm1215_vm3, %v2192_v51  ;;  %2056 = vmatmul.mubr.msk.bf16.gmra.mrb[12].mxu1 %vm1215_vm3, %v2193_v53  ;;  %v2960_v42 = vpop.permute.xlu0 %822 }
 0x1da   : > { %1390 = vmatprep.mubr.bf16.mxu0 %v2380_v0  ;;  %1540 = vmatprep.mubr.bf16.mxu1 %v2380_v0 }
 0x1dd   : > { %v2964_v46 = vpop.permute.xlu0 %832 }
 0x1e1   : > { %2042 = vmatmul.mubr.msk.bf16.gmra.mrb[24].mxu0 %vm1215_vm3, %v2194_v54  ;;  %2057 = vmatmul.mubr.msk.bf16.gmra.mrb[16].mxu1 %vm1215_vm3, %v2195_v55  ;;  %v2968_v48 = vpop.permute.xlu0 %842 }
 0x1e2   : > { %1400 = vmatprep.mubr.bf16.mxu0 %v2380_v0  ;;  %1550 = vmatprep.mubr.bf16.mxu1 %v2380_v0 }
 0x1e5   : > { %v2972_v51 = vpop.permute.xlu0 %852 }
 0x1e9   : > { %2043 = vmatmul.mubr.msk.bf16.gmra.mrb[28].mxu0 %vm1215_vm3, %v2196_v56  ;;  %2058 = vmatmul.mubr.msk.bf16.gmra.mrb[20].mxu1 %vm1215_vm3, %v2197_v57  ;;  %v863_v54 = vpop.permute.xlu0 %862 }
 0x1ea   : > { %1410 = vmatprep.mubr.bf16.mxu0 %v2380_v0  ;;  %1560 = vmatprep.mubr.bf16.mxu1 %v2380_v0 }
 0x1f1   : > { %2044 = vmatmul.mubr.msk.bf16.gmra.mrb[32].mxu0 %vm1215_vm3, %v2198_v58  ;;  %2059 = vmatmul.mubr.msk.bf16.gmra.mrb[24].mxu1 %vm1215_vm3, %v2199_v59 }
 0x1f2   : > { %1420 = vmatprep.mubr.bf16.mxu0 %v2380_v0  ;;  %1570 = vmatprep.mubr.bf16.mxu1 %v2380_v0 }
 0x1f9   : > { %2045 = vmatmul.mubr.msk.bf16.gmra.mrb[36].mxu0 %vm1215_vm3, %v2200_v60  ;;  %2060 = vmatmul.mubr.msk.bf16.gmra.mrb[28].mxu1 %vm1215_vm3, %v2201_v61 }
 0x1fa   : > { %1430 = vmatprep.mubr.bf16.mxu0 %v2380_v0  ;;  %1580 = vmatprep.mubr.bf16.mxu1 %v2380_v0 }
 0x201   : > { %2046 = vmatmul.mubr.msk.bf16.gmra.mrb[40].mxu0 %vm1215_vm3, %v2202_v1  ;;  %2061 = vmatmul.mubr.msk.bf16.gmra.mrb[32].mxu1 %vm1215_vm3, %v2203_v2 }
 0x202   : > { %1440 = vmatprep.mubr.bf16.mxu0 %v2380_v0  ;;  %1590 = vmatprep.mubr.bf16.mxu1 %v2380_v0 }
 0x209   : > { %2047 = vmatmul.mubr.msk.bf16.gmra.mrb[44].mxu0 %vm1215_vm3, %v2204_v3  ;;  %2062 = vmatmul.mubr.msk.bf16.gmra.mrb[36].mxu1 %vm1215_vm3, %v2205_v4 }
 0x20a   : > { %1450 = vmatprep.mubr.bf16.mxu0 %v2380_v0  ;;  %1600 = vmatprep.mubr.bf16.mxu1 %v2380_v0 }
 0x211   : > { %2048 = vmatmul.mubr.msk.bf16.gmra.mrb[48].mxu0 %vm1215_vm3, %v2206_v6  ;;  %2063 = vmatmul.mubr.msk.bf16.gmra.mrb[40].mxu1 %vm1215_vm3, %v2207_v8 }
 0x212   : > { %1460 = vmatprep.mubr.bf16.mxu0 %v2380_v0  ;;  %1610 = vmatprep.mubr.bf16.mxu1 %v2380_v0 }
 0x219   : > { %2049 = vmatmul.mubr.msk.bf16.gmra.mrb[52].mxu0 %vm1215_vm3, %v2208_v9  ;;  %2064 = vmatmul.mubr.msk.bf16.gmra.mrb[44].mxu1 %vm1215_vm3, %v2209_v10 }
 0x21a   : > { %1470 = vmatprep.mubr.bf16.mxu0 %v2380_v0  ;;  %1620 = vmatprep.mubr.bf16.mxu1 %v2380_v0 }
 0x221   : > { %2050 = vmatmul.mubr.msk.bf16.gmra.mrb[56].mxu0 %vm1215_vm3, %v2210_v11  ;;  %2065 = vmatmul.mubr.msk.bf16.gmra.mrb[48].mxu1 %vm1215_vm3, %v2211_v12 }
 0x222   : > { %1480 = vmatprep.mubr.bf16.mxu0 %v2380_v0  ;;  %1630 = vmatprep.mubr.bf16.mxu1 %v2380_v0 }
 0x229   : > { %2051 = vmatmul.mubr.msk.bf16.gmra.mrb[60].mxu0 %vm1215_vm3, %v2212_v13  ;;  %2066 = vmatmul.mubr.msk.bf16.gmra.mrb[52].mxu1 %vm1215_vm3, %v2213_v14 }
 0x22a   : > { %1490 = vmatprep.mubr.bf16.mxu0 %v2380_v0  ;;  %1640 = vmatprep.mubr.bf16.mxu1 %v2380_v0 }
 0x231   : > { %2052 = vmatmul.mubr.msk.bf16.gmra.mrb[64].mxu0 %vm1215_vm3, %v2214_v15  ;;  %2067 = vmatmul.mubr.msk.bf16.gmra.mrb[56].mxu1 %vm1215_vm3, %v2215_v16 }
 0x232   : > { %1650 = vmatprep.mubr.bf16.mxu1 %v2380_v0 }
 0x239   : > { %2068 = vmatmul.mubr.msk.bf16.gmra.mrb[60].mxu1 %vm1215_vm3, %v2216_v17 }
 0x23a   : > { %1660 = vmatprep.mubr.bf16.mxu1 %v2380_v0 }
 0x241   : > { %2069 = vmatmul.mubr.msk.bf16.gmra.mrb[64].mxu1 %vm1215_vm3, %v2217_v20 }
 0x242   : > { %1670 = vmatprep.mubr.bf16.mxu1 %v2380_v0 }
 0x249   : > { %2070 = vmatmul.mubr.msk.bf16.gmra.mrb[68].mxu1 %vm1215_vm3, %v2218_v25 }
 0x24a   : > { %1680 = vmatprep.mubr.bf16.mxu1 %v2380_v0  ;;  %v2942_v0 = vpop.permute.xlu1 %767 }
 0x24e   : > { %v2946_v35 = vpop.permute.xlu1 %777 }
 0x251   : > { %2071 = vmatmul.mubr.msk.bf16.gmra.mrb[72].mxu1 %vm1215_vm3, %v2219_v28 }
 0x252   : > { %v2950_v37 = vpop.permute.xlu1 %787 }
 0x256   : > { %v2954_v39 = vpop.permute.xlu1 %797 }
 0x25a   : > { %v2958_v41 = vpop.permute.xlu1 %807 }
 0x25e   : > { %v2962_v43 = vpop.permute.xlu1 %817 }
 0x262   : > { %v2966_v47 = vpop.permute.xlu1 %827 }
 0x266   : > { %v2970_v49 = vpop.permute.xlu1 %837 }
 0x26a   : > { %v2974_v53 = vpop.permute.xlu1 %847 }
 0x26e   : > { %v858_v55 = vpop.permute.xlu1 %857 }
 0x272   : > { %v868_v16 = vpop.permute.xlu1 %867 }
 0x294   : > { %v1352_v56 = vpop.f32.mrb[8].mxu0  ;;  %v1502_v57 = vpop.f32.mrb[0].mxu1 }
 0x295   : > { %v1353_v58 = vadd.f32 %v1352_v56, %v708_v19  ;;  %v1503_v59 = vadd.f32 %v1502_v57, %v858_v55  ;;  %v1354_v60 = vpop.f32.mrb[9].mxu0  ;;  %v1504_v61 = vpop.f32.mrb[1].mxu1 }
 0x296   : > { %v1355_v1 = vadd.f32 %v1354_v60, %v708_v19  ;;  %v1505_v2 = vadd.f32 %v1504_v61, %v858_v55  ;;  %v1356_v3 = vpop.f32.mrb[10].mxu0  ;;  %v1506_v4 = vpop.f32.mrb[2].mxu1 }
 0x297   : > { %v1691_v6 = vadd.f32 %v1353_v58, %v2659_v50  ;;  %1759 = vst [vmem:[%s2982_s13 + $0x1a0] sm:$0xff] %v1503_v59  ;;  %v1357_v8 = vadd.f32 %v1356_v3, %v2902_v18  ;;  %v1507_v9 = vadd.f32 %v1506_v4, %v863_v54  ;;  %v1358_v10 = vpop.f32.mrb[11].mxu0  ;;  %v1508_v11 = vpop.f32.mrb[3].mxu1 }
 0x298   : > { %v1692_v12 = vadd.f32 %v1355_v1, %v2645_v44  ;;  %1760 = vst [vmem:[%s2982_s13 + $0x1a8] sm:$0xff] %v1505_v2  ;;  %v1359_v13 = vadd.f32 %v1358_v10, %v2902_v18  ;;  %v1509_v14 = vadd.f32 %v1508_v11, %v863_v54  ;;  %v873_v44 = vpop.permute.xlu0 %872  ;;  %v878_v4 = vpop.permute.xlu1 %877 }
 0x299   : > { %1699 = vst [vmem:[%s2989_s14] sm:$0xff] %v1691_v6  ;;  %v1693_v50 = vadd.f32 %v1357_v8, %v2662_v52  ;;  %1761 = vst [vmem:[%s2982_s13 + $0x1b0] sm:$0xff] %v1507_v9 }
 0x29a   : > { %1700 = vst [vmem:[%s2989_s14 + $0x8] sm:$0xff] %v1692_v12  ;;  %v1694_v15 = vadd.f32 %v1359_v13, %v2648_v45  ;;  %1762 = vst [vmem:[%s2982_s13 + $0x1b8] sm:$0xff] %v1509_v14 }
 0x29b   : > { %1701 = vst [vmem:[%s2989_s14 + $0x10] sm:$0xff] %v1693_v50 }
 0x29c   : > { %1702 = vst [vmem:[%s2989_s14 + $0x18] sm:$0xff] %v1694_v15  ;;  %v1362_v17 = vpop.f32.mrb[12].mxu0  ;;  %v1512_v18 = vpop.f32.mrb[4].mxu1 }
 0x29d   : > { %v1363_v19 = vadd.f32 %v1362_v17, %v2911_v22  ;;  %v1513_v20 = vadd.f32 %v1512_v18, %v868_v16  ;;  %v1364_v25 = vpop.f32.mrb[13].mxu0  ;;  %v1514_v28 = vpop.f32.mrb[5].mxu1 }
 0x29e   : > { %v1365_v52 = vadd.f32 %v1364_v25, %v2911_v22  ;;  %v1515_v54 = vadd.f32 %v1514_v28, %v868_v16  ;;  %v1366_v45 = vpop.f32.mrb[14].mxu0  ;;  %v1516_v55 = vpop.f32.mrb[6].mxu1 }
 0x29f   : > { %v1695_v56 = vadd.f32 %v1363_v19, %v2693_v5  ;;  %1763 = vst [vmem:[%s2982_s13 + $0x1c0] sm:$0xff] %v1513_v20  ;;  %v1367_v57 = vadd.f32 %v1366_v45, %v2909_v21  ;;  %v1517_v58 = vadd.f32 %v1516_v55, %v873_v44  ;;  %v1368_v59 = vpop.f32.mrb[15].mxu0  ;;  %v1518_v60 = vpop.f32.mrb[7].mxu1 }
 0x2a0   : > { %v1696_v61 = vadd.f32 %v1365_v52, %v2679_v62  ;;  %1764 = vst [vmem:[%s2982_s13 + $0x1c8] sm:$0xff] %v1515_v54  ;;  %v1369_v22 = vadd.f32 %v1368_v59, %v2909_v21  ;;  %v1519_v1 = vadd.f32 %v1518_v60, %v873_v44  ;;  %v883_v3 = vpop.permute.xlu0 %882 }
 0x2a1   : > { %1703 = vst [vmem:[%s2989_s14 + $0x20] sm:$0xff] %v1695_v56  ;;  %v1697_v2 = vadd.f32 %v1367_v57, %v2696_v7  ;;  %1765 = vst [vmem:[%s2982_s13 + $0x1d0] sm:$0xff] %v1517_v58 }
 0x2a2   : > { %1704 = vst [vmem:[%s2989_s14 + $0x28] sm:$0xff] %v1696_v61  ;;  %v1698_v5 = vadd.f32 %v1369_v22, %v2682_v63  ;;  %1766 = vst [vmem:[%s2982_s13 + $0x1d8] sm:$0xff] %v1519_v1 }
 0x2a3   : > { %1705 = vst [vmem:[%s2989_s14 + $0x30] sm:$0xff] %v1697_v2 }
 0x2a4   : > { %1706 = vst [vmem:[%s2989_s14 + $0x38] sm:$0xff] %v1698_v5  ;;  %v1372_v6 = vpop.f32.mrb[16].mxu0  ;;  %v1522_v62 = vpop.f32.mrb[8].mxu1 }
 0x2a5   : > { %v1373_v21 = vadd.f32 %v1372_v6, %v2917_v24  ;;  %v1523_v8 = vadd.f32 %v1522_v62, %v878_v4  ;;  %v1374_v9 = vpop.f32.mrb[17].mxu0  ;;  %v1524_v7 = vpop.f32.mrb[9].mxu1 }
 0x2a6   : > { %v1375_v63 = vadd.f32 %v1374_v9, %v2917_v24  ;;  %v1525_v10 = vadd.f32 %v1524_v7, %v878_v4  ;;  %v1376_v11 = vpop.f32.mrb[18].mxu0  ;;  %v1526_v12 = vpop.f32.mrb[10].mxu1 }
 0x2a7   : > { %1707 = vst [vmem:[%s2982_s13] sm:$0xff] %v1373_v21  ;;  %1767 = vst [vmem:[%s2982_s13 + $0x1e0] sm:$0xff] %v1523_v8  ;;  %v1377_v13 = vadd.f32 %v1376_v11, %v2915_v23  ;;  %v1527_v14 = vadd.f32 %v1526_v12, %v883_v3  ;;  %v1378_v50 = vpop.f32.mrb[19].mxu0  ;;  %v1528_v15 = vpop.f32.mrb[11].mxu1 }
 0x2a8   : > { %1708 = vst [vmem:[%s2982_s13 + $0x8] sm:$0xff] %v1375_v63  ;;  %1768 = vst [vmem:[%s2982_s13 + $0x1e8] sm:$0xff] %v1525_v10  ;;  %v1379_v44 = vadd.f32 %v1378_v50, %v2915_v23  ;;  %v1529_v24 = vadd.f32 %v1528_v15, %v883_v3  ;;  %v893_v16 = vpop.permute.xlu0 %892  ;;  %v888_v23 = vpop.permute.xlu1 %887 }
 0x2a9   : > { %1709 = vst [vmem:[%s2982_s13 + $0x10] sm:$0xff] %v1377_v13  ;;  %1769 = vst [vmem:[%s2982_s13 + $0x1f0] sm:$0xff] %v1527_v14 }
 0x2aa   : > { %1710 = vst [vmem:[%s2982_s13 + $0x18] sm:$0xff] %v1379_v44  ;;  %1770 = vst [vmem:[%s2982_s13 + $0x1f8] sm:$0xff] %v1529_v24 }
 0x2ac   : > { %v1382_v17 = vpop.f32.mrb[20].mxu0  ;;  %v1532_v18 = vpop.f32.mrb[12].mxu1 }
 0x2ad   : > { %2281 = shalt.err (!%p2278_p5)
}
 0x2ae   : > { %s2282_s12 = scalar_lea.hbm %s3032_s19, 1024  ;;  %s2286_s17 = scalar_lea.hbm %s3286_s5, 2048 }
 0x2af   : > { %p2283_p6 = scmp.ne.s32.totalorder %s3032_s19, %s2282_s12  ;;  %p2287_p10 = scmp.lt.u32.totalorder %s3032_s19, %s3286_s5 }
 0x2b0   : > { %p2288_p11 = scmp.lt.u32.totalorder %s2286_s17, %s2282_s12  ;;  %p2290_p13 = scmp.lt.u32.totalorder %s2282_s12, %s3032_s19 }
 0x2b1   : > { %p2284_p7 = pnand %p2283_p6, %p2462_p4 }
 0x2b2   : > { %p2289_p12 = por %p2288_p11, %p2287_p10 }
 0x2b3   : > { %p2285_p9 = pneg %p2284_p7 }
 0x2b4   : > { %p2291_p0 = por %p2290_p13, %p2289_p12 }
 0x2b6   : > { %p2292_p1 = pnand %p2291_p0, %p2285_p9 }
 0x2b8   : > { %2295 = shalt.err (!%p2292_p1)
}
 0x2b9   : > { %s2384_s27 = smov 256   ;;  %s2385_s30 = smov 16   ;;  %v1383_v19 = vadd.f32 %v1382_v17, %v2926_v27  ;;  %v1533_v20 = vadd.f32 %v1532_v18, %v888_v23  ;;  %v1384_v25 = vpop.f32.mrb[21].mxu0  ;;  %v1534_v28 = vpop.f32.mrb[13].mxu1 }
 0x2ba   : > { %2087 = dma.vmem_to_hbm [thread:$0]  (%p2462_p4), %s3034_s16, 1024, %s3032_s19, %s1836_s20, %s2384_s27, %s2384_s27, %s2385_s30   ;;  %v1385_v52 = vadd.f32 %v1384_v25, %v2926_v27  ;;  %v1535_v54 = vadd.f32 %v1534_v28, %v888_v23  ;;  %v1386_v45 = vpop.f32.mrb[22].mxu0  ;;  %v1536_v55 = vpop.f32.mrb[14].mxu1 }
 0x2bb   : > { %1711 = vst [vmem:[%s2982_s13 + $0x20] sm:$0xff] %v1383_v19  ;;  %1771 = vst [vmem:[%s2982_s13 + $0x200] sm:$0xff] %v1533_v20  ;;  %v1387_v56 = vadd.f32 %v1386_v45, %v2924_v26  ;;  %v1537_v57 = vadd.f32 %v1536_v55, %v893_v16  ;;  %v1388_v58 = vpop.f32.mrb[23].mxu0  ;;  %v1538_v59 = vpop.f32.mrb[15].mxu1  ;;  %s2081_s16 = sshll.u32 %s2370_s24, 14  ;;  %s1874_s19 = sshll.u32 %s2982_s13, 4  ;;  %s3228_s19 = int_to_ptr.vmem [resolvable:$true] %s1874_s19 }
 0x2bc   : > { %1712 = vst [vmem:[%s2982_s13 + $0x28] sm:$0xff] %v1385_v52  ;;  %1772 = vst [vmem:[%s2982_s13 + $0x208] sm:$0xff] %v1535_v54  ;;  %v1389_v60 = vadd.f32 %v1388_v58, %v2924_v26  ;;  %v1539_v61 = vadd.f32 %v1538_v59, %v893_v16  ;;  %v903_v27 = vpop.permute.xlu0 %902  ;;  %v898_v22 = vpop.permute.xlu1 %897  ;;  %s3226_s12 = scalar_lea.hbm %s3287_s6, %s2081_s16  ;;  %s1841_s24 = scalar_lea.sflag [#allocation5], %s2977_s8 }
 0x2bd   : > { %1713 = vst [vmem:[%s2982_s13 + $0x30] sm:$0xff] %v1387_v56  ;;  %1773 = vst [vmem:[%s2982_s13 + $0x210] sm:$0xff] %v1537_v57  ;;  %v1392_v1 = vpop.f32.mrb[24].mxu0  ;;  %v1542_v2 = vpop.f32.mrb[16].mxu1  ;;  %s2296_s14 = scalar_lea.vmem %s3228_s19, 16384  ;;  %s2386_s15 = smov [#allocation4]  }
 0x2be   : > { %1714 = vst [vmem:[%s2982_s13 + $0x38] sm:$0xff] %v1389_v60  ;;  %1774 = vst [vmem:[%s2982_s13 + $0x218] sm:$0xff] %v1539_v61  ;;  %v1393_v5 = vadd.f32 %v1392_v1, %v2933_v30  ;;  %v1543_v3 = vadd.f32 %v1542_v2, %v898_v22  ;;  %v1394_v4 = vpop.f32.mrb[25].mxu0  ;;  %v1544_v6 = vpop.f32.mrb[17].mxu1  ;;  %p2297_p2 = scmp.ne.s32.totalorder %s3228_s19, %s2296_s14  ;;  %s2300_s17 = sshll.u32 %s2386_s15, 4  ;;  %s2301_s17 = int_to_ptr.vmem [resolvable:$false] %s2300_s17 }
 0x2bf   : > { %v1395_v26 = vadd.f32 %v1394_v4, %v2933_v30  ;;  %v1545_v62 = vadd.f32 %v1544_v6, %v898_v22  ;;  %v1396_v21 = vpop.f32.mrb[26].mxu0  ;;  %v1546_v8 = vpop.f32.mrb[18].mxu1  ;;  %s2302_s18 = scalar_lea.vmem %s2301_s17, 32768  ;;  %p2303_p6 = scmp.lt.s32.totalorder %s3228_s19, %s2301_s17 }
 0x2c0   : > { %1715 = vst [vmem:[%s2982_s13 + $0x40] sm:$0xff] %v1393_v5  ;;  %1775 = vst [vmem:[%s2982_s13 + $0x220] sm:$0xff] %v1543_v3  ;;  %v1397_v9 = vadd.f32 %v1396_v21, %v2931_v29  ;;  %v1547_v7 = vadd.f32 %v1546_v8, %v903_v27  ;;  %v1398_v63 = vpop.f32.mrb[27].mxu0  ;;  %v1548_v10 = vpop.f32.mrb[19].mxu1  ;;  %p2298_p3 = pnand %p2297_p2, %p2462_p4  ;;  %p2304_p7 = scmp.lt.s32.totalorder %s2302_s18, %s2296_s14 }
 0x2c1   : > { %1716 = vst [vmem:[%s2982_s13 + $0x48] sm:$0xff] %v1395_v26  ;;  %1776 = vst [vmem:[%s2982_s13 + $0x228] sm:$0xff] %v1545_v62  ;;  %v1399_v11 = vadd.f32 %v1398_v63, %v2931_v29  ;;  %v1549_v12 = vadd.f32 %v1548_v10, %v903_v27  ;;  %v913_v30 = vpop.permute.xlu0 %912  ;;  %v908_v13 = vpop.permute.xlu1 %907 }
 0x2c2   : > { %1717 = vst [vmem:[%s2982_s13 + $0x50] sm:$0xff] %v1397_v9  ;;  %1777 = vst [vmem:[%s2982_s13 + $0x230] sm:$0xff] %v1547_v7  ;;  %v1402_v14 = vpop.f32.mrb[28].mxu0  ;;  %v1552_v50 = vpop.f32.mrb[20].mxu1  ;;  %p2299_p5 = pneg %p2298_p3  ;;  %p2305_p9 = por %p2304_p7, %p2303_p6 }
 0x2c3   : > { %1718 = vst [vmem:[%s2982_s13 + $0x58] sm:$0xff] %v1399_v11  ;;  %1778 = vst [vmem:[%s2982_s13 + $0x238] sm:$0xff] %v1549_v12  ;;  %v1403_v15 = vadd.f32 %v1402_v14, %v2938_v32  ;;  %v1553_v44 = vadd.f32 %v1552_v50, %v908_v13  ;;  %v1404_v24 = vpop.f32.mrb[29].mxu0  ;;  %v1554_v16 = vpop.f32.mrb[21].mxu1 }
 0x2c4   : > { %v1405_v29 = vadd.f32 %v1404_v24, %v2938_v32  ;;  %v1555_v23 = vadd.f32 %v1554_v16, %v908_v13  ;;  %v1406_v17 = vpop.f32.mrb[30].mxu0  ;;  %v1556_v18 = vpop.f32.mrb[22].mxu1  ;;  %p2306_p10 = pnand %p2305_p9, %p2299_p5 }
 0x2c5   : > { %1719 = vst [vmem:[%s2982_s13 + $0x60] sm:$0xff] %v1403_v15  ;;  %1779 = vst [vmem:[%s2982_s13 + $0x240] sm:$0xff] %v1553_v44  ;;  %v1407_v19 = vadd.f32 %v1406_v17, %v2936_v31  ;;  %v1557_v20 = vadd.f32 %v1556_v18, %v913_v30  ;;  %v1408_v25 = vpop.f32.mrb[31].mxu0  ;;  %v1558_v28 = vpop.f32.mrb[23].mxu1 }
 0x2c6   : > { %1720 = vst [vmem:[%s2982_s13 + $0x68] sm:$0xff] %v1405_v29  ;;  %1780 = vst [vmem:[%s2982_s13 + $0x248] sm:$0xff] %v1555_v23  ;;  %v1409_v52 = vadd.f32 %v1408_v25, %v2936_v31  ;;  %v1559_v54 = vadd.f32 %v1558_v28, %v913_v30  ;;  %v923_v32 = vpop.permute.xlu0 %922  ;;  %v918_v45 = vpop.permute.xlu1 %917 }
 0x2c7   : > { %1721 = vst [vmem:[%s2982_s13 + $0x70] sm:$0xff] %v1407_v19  ;;  %1781 = vst [vmem:[%s2982_s13 + $0x250] sm:$0xff] %v1557_v20  ;;  %v1412_v55 = vpop.f32.mrb[32].mxu0  ;;  %v1562_v56 = vpop.f32.mrb[24].mxu1 }
 0x2c8   : > { %1722 = vst [vmem:[%s2982_s13 + $0x78] sm:$0xff] %v1409_v52  ;;  %1782 = vst [vmem:[%s2982_s13 + $0x258] sm:$0xff] %v1559_v54  ;;  %v1413_v57 = vadd.f32 %v1412_v55, %v2942_v0  ;;  %v1563_v58 = vadd.f32 %v1562_v56, %v918_v45  ;;  %v1414_v59 = vpop.f32.mrb[33].mxu0  ;;  %v1564_v60 = vpop.f32.mrb[25].mxu1 }
 0x2c9   : > { %v1415_v31 = vadd.f32 %v1414_v59, %v2942_v0  ;;  %v1565_v61 = vadd.f32 %v1564_v60, %v918_v45  ;;  %v1416_v27 = vpop.f32.mrb[34].mxu0  ;;  %v1566_v22 = vpop.f32.mrb[26].mxu1 }
 0x2ca   : > { %1723 = vst [vmem:[%s2982_s13 + $0x80] sm:$0xff] %v1413_v57  ;;  %1783 = vst [vmem:[%s2982_s13 + $0x260] sm:$0xff] %v1563_v58  ;;  %v1417_v1 = vadd.f32 %v1416_v27, %v2940_v33  ;;  %v1567_v2 = vadd.f32 %v1566_v22, %v923_v32  ;;  %v1418_v5 = vpop.f32.mrb[35].mxu0  ;;  %v1568_v3 = vpop.f32.mrb[27].mxu1 }
 0x2cb   : > { %1724 = vst [vmem:[%s2982_s13 + $0x88] sm:$0xff] %v1415_v31  ;;  %1784 = vst [vmem:[%s2982_s13 + $0x268] sm:$0xff] %v1565_v61  ;;  %v1419_v4 = vadd.f32 %v1418_v5, %v2940_v33  ;;  %v1569_v6 = vadd.f32 %v1568_v3, %v923_v32  ;;  %v933_v0 = vpop.permute.xlu0 %932  ;;  %v928_v26 = vpop.permute.xlu1 %927 }
 0x2cc   : > { %1725 = vst [vmem:[%s2982_s13 + $0x90] sm:$0xff] %v1417_v1  ;;  %1785 = vst [vmem:[%s2982_s13 + $0x270] sm:$0xff] %v1567_v2  ;;  %v1422_v62 = vpop.f32.mrb[36].mxu0  ;;  %v1572_v21 = vpop.f32.mrb[28].mxu1 }
 0x2cd   : > { %1726 = vst [vmem:[%s2982_s13 + $0x98] sm:$0xff] %v1419_v4  ;;  %1786 = vst [vmem:[%s2982_s13 + $0x278] sm:$0xff] %v1569_v6  ;;  %v1423_v8 = vadd.f32 %v1422_v62, %v2946_v35  ;;  %v1573_v9 = vadd.f32 %v1572_v21, %v928_v26  ;;  %v1424_v7 = vpop.f32.mrb[37].mxu0  ;;  %v1574_v63 = vpop.f32.mrb[29].mxu1 }
 0x2ce   : > { %v1425_v33 = vadd.f32 %v1424_v7, %v2946_v35  ;;  %v1575_v10 = vadd.f32 %v1574_v63, %v928_v26  ;;  %v1426_v11 = vpop.f32.mrb[38].mxu0  ;;  %v1576_v12 = vpop.f32.mrb[30].mxu1 }
 0x2cf   : > { %1727 = vst [vmem:[%s2982_s13 + $0xa0] sm:$0xff] %v1423_v8  ;;  %1787 = vst [vmem:[%s2982_s13 + $0x280] sm:$0xff] %v1573_v9  ;;  %v1427_v30 = vadd.f32 %v1426_v11, %v2944_v34  ;;  %v1577_v13 = vadd.f32 %v1576_v12, %v933_v0  ;;  %v1428_v14 = vpop.f32.mrb[39].mxu0  ;;  %v1578_v50 = vpop.f32.mrb[31].mxu1 }
 0x2d0   : > { %1728 = vst [vmem:[%s2982_s13 + $0xa8] sm:$0xff] %v1425_v33  ;;  %1788 = vst [vmem:[%s2982_s13 + $0x288] sm:$0xff] %v1575_v10  ;;  %v1429_v15 = vadd.f32 %v1428_v14, %v2944_v34  ;;  %v1579_v44 = vadd.f32 %v1578_v50, %v933_v0  ;;  %v943_v35 = vpop.permute.xlu0 %942  ;;  %v938_v24 = vpop.permute.xlu1 %937 }
 0x2d1   : > { %1729 = vst [vmem:[%s2982_s13 + $0xb0] sm:$0xff] %v1427_v30  ;;  %1789 = vst [vmem:[%s2982_s13 + $0x290] sm:$0xff] %v1577_v13 }
 0x2d2   : > { %1730 = vst [vmem:[%s2982_s13 + $0xb8] sm:$0xff] %v1429_v15  ;;  %1790 = vst [vmem:[%s2982_s13 + $0x298] sm:$0xff] %v1579_v44 }
 0x2d4   : > { %v1432_v16 = vpop.f32.mrb[40].mxu0  ;;  %v1582_v29 = vpop.f32.mrb[32].mxu1 }
 0x2d5   : > { %v1433_v23 = vadd.f32 %v1432_v16, %v2950_v37  ;;  %v1583_v17 = vadd.f32 %v1582_v29, %v938_v24  ;;  %v1434_v18 = vpop.f32.mrb[41].mxu0  ;;  %v1584_v19 = vpop.f32.mrb[33].mxu1 }
 0x2d6   : > { %v1435_v34 = vadd.f32 %v1434_v18, %v2950_v37  ;;  %v1585_v20 = vadd.f32 %v1584_v19, %v938_v24  ;;  %v1436_v25 = vpop.f32.mrb[42].mxu0  ;;  %v1586_v28 = vpop.f32.mrb[34].mxu1 }
 0x2d7   : > { %1731 = vst [vmem:[%s2982_s13 + $0xc0] sm:$0xff] %v1433_v23  ;;  %1791 = vst [vmem:[%s2982_s13 + $0x2a0] sm:$0xff] %v1583_v17  ;;  %v1437_v52 = vadd.f32 %v1436_v25, %v2948_v36  ;;  %v1587_v54 = vadd.f32 %v1586_v28, %v943_v35  ;;  %v1438_v32 = vpop.f32.mrb[43].mxu0  ;;  %v1588_v45 = vpop.f32.mrb[35].mxu1 }
 0x2d8   : > { %1732 = vst [vmem:[%s2982_s13 + $0xc8] sm:$0xff] %v1435_v34  ;;  %1792 = vst [vmem:[%s2982_s13 + $0x2a8] sm:$0xff] %v1585_v20  ;;  %v1439_v55 = vadd.f32 %v1438_v32, %v2948_v36  ;;  %v1589_v56 = vadd.f32 %v1588_v45, %v943_v35  ;;  %v953_v37 = vpop.permute.xlu0 %952  ;;  %v948_v57 = vpop.permute.xlu1 %947 }
 0x2d9   : > { %1733 = vst [vmem:[%s2982_s13 + $0xd0] sm:$0xff] %v1437_v52  ;;  %1793 = vst [vmem:[%s2982_s13 + $0x2b0] sm:$0xff] %v1587_v54 }
 0x2da   : > { %1734 = vst [vmem:[%s2982_s13 + $0xd8] sm:$0xff] %v1439_v55  ;;  %1794 = vst [vmem:[%s2982_s13 + $0x2b8] sm:$0xff] %v1589_v56 }
 0x2dc   : > { %v1442_v58 = vpop.f32.mrb[44].mxu0  ;;  %v1592_v59 = vpop.f32.mrb[36].mxu1 }
 0x2dd   : > { %v1443_v60 = vadd.f32 %v1442_v58, %v2954_v39  ;;  %v1593_v31 = vadd.f32 %v1592_v59, %v948_v57  ;;  %v1444_v61 = vpop.f32.mrb[45].mxu0  ;;  %v1594_v27 = vpop.f32.mrb[37].mxu1 }
 0x2de   : > { %v1445_v36 = vadd.f32 %v1444_v61, %v2954_v39  ;;  %v1595_v22 = vadd.f32 %v1594_v27, %v948_v57  ;;  %v1446_v1 = vpop.f32.mrb[46].mxu0  ;;  %v1596_v2 = vpop.f32.mrb[38].mxu1 }
 0x2df   : > { %1735 = vst [vmem:[%s2982_s13 + $0xe0] sm:$0xff] %v1443_v60  ;;  %1795 = vst [vmem:[%s2982_s13 + $0x2c0] sm:$0xff] %v1593_v31  ;;  %v1447_v5 = vadd.f32 %v1446_v1, %v2952_v38  ;;  %v1597_v3 = vadd.f32 %v1596_v2, %v953_v37  ;;  %v1448_v4 = vpop.f32.mrb[47].mxu0  ;;  %v1598_v6 = vpop.f32.mrb[39].mxu1 }
 0x2e0   : > { %1736 = vst [vmem:[%s2982_s13 + $0xe8] sm:$0xff] %v1445_v36  ;;  %1796 = vst [vmem:[%s2982_s13 + $0x2c8] sm:$0xff] %v1595_v22  ;;  %v1449_v0 = vadd.f32 %v1448_v4, %v2952_v38  ;;  %v1599_v26 = vadd.f32 %v1598_v6, %v953_v37  ;;  %v963_v39 = vpop.permute.xlu0 %962  ;;  %v958_v62 = vpop.permute.xlu1 %957 }
 0x2e1   : > { %1737 = vst [vmem:[%s2982_s13 + $0xf0] sm:$0xff] %v1447_v5  ;;  %1797 = vst [vmem:[%s2982_s13 + $0x2d0] sm:$0xff] %v1597_v3 }
 0x2e2   : > { %1738 = vst [vmem:[%s2982_s13 + $0xf8] sm:$0xff] %v1449_v0  ;;  %1798 = vst [vmem:[%s2982_s13 + $0x2d8] sm:$0xff] %v1599_v26 }
 0x2e4   : > { %v1452_v21 = vpop.f32.mrb[48].mxu0  ;;  %v1602_v8 = vpop.f32.mrb[40].mxu1 }
 0x2e5   : > { %v1453_v9 = vadd.f32 %v1452_v21, %v2958_v41  ;;  %v1603_v7 = vadd.f32 %v1602_v8, %v958_v62  ;;  %v1454_v63 = vpop.f32.mrb[49].mxu0  ;;  %v1604_v33 = vpop.f32.mrb[41].mxu1 }
 0x2e6   : > { %v1455_v38 = vadd.f32 %v1454_v63, %v2958_v41  ;;  %v1605_v10 = vadd.f32 %v1604_v33, %v958_v62  ;;  %v1456_v11 = vpop.f32.mrb[50].mxu0  ;;  %v1606_v12 = vpop.f32.mrb[42].mxu1 }
 0x2e7   : > { %1739 = vst [vmem:[%s2982_s13 + $0x100] sm:$0xff] %v1453_v9  ;;  %1799 = vst [vmem:[%s2982_s13 + $0x2e0] sm:$0xff] %v1603_v7  ;;  %v1457_v30 = vadd.f32 %v1456_v11, %v2956_v40  ;;  %v1607_v13 = vadd.f32 %v1606_v12, %v963_v39  ;;  %v1458_v14 = vpop.f32.mrb[51].mxu0  ;;  %v1608_v50 = vpop.f32.mrb[43].mxu1 }
 0x2e8   : > { %1740 = vst [vmem:[%s2982_s13 + $0x108] sm:$0xff] %v1455_v38  ;;  %1800 = vst [vmem:[%s2982_s13 + $0x2e8] sm:$0xff] %v1605_v10  ;;  %v1459_v15 = vadd.f32 %v1458_v14, %v2956_v40  ;;  %v1609_v44 = vadd.f32 %v1608_v50, %v963_v39  ;;  %v973_v41 = vpop.permute.xlu0 %972  ;;  %v968_v35 = vpop.permute.xlu1 %967 }
 0x2e9   : > { %1741 = vst [vmem:[%s2982_s13 + $0x110] sm:$0xff] %v1457_v30  ;;  %1801 = vst [vmem:[%s2982_s13 + $0x2f0] sm:$0xff] %v1607_v13 }
 0x2ea   : > { %1742 = vst [vmem:[%s2982_s13 + $0x118] sm:$0xff] %v1459_v15  ;;  %1802 = vst [vmem:[%s2982_s13 + $0x2f8] sm:$0xff] %v1609_v44 }
 0x2ec   : > { %v1462_v24 = vpop.f32.mrb[52].mxu0  ;;  %v1612_v16 = vpop.f32.mrb[44].mxu1 }
 0x2ed   : > { %v1463_v29 = vadd.f32 %v1462_v24, %v2962_v43  ;;  %v1613_v23 = vadd.f32 %v1612_v16, %v968_v35  ;;  %v1464_v17 = vpop.f32.mrb[53].mxu0  ;;  %v1614_v18 = vpop.f32.mrb[45].mxu1 }
 0x2ee   : > { %v1465_v40 = vadd.f32 %v1464_v17, %v2962_v43  ;;  %v1615_v19 = vadd.f32 %v1614_v18, %v968_v35  ;;  %v1466_v34 = vpop.f32.mrb[54].mxu0  ;;  %v1616_v20 = vpop.f32.mrb[46].mxu1 }
 0x2ef   : > { %1743 = vst [vmem:[%s2982_s13 + $0x120] sm:$0xff] %v1463_v29  ;;  %1803 = vst [vmem:[%s2982_s13 + $0x300] sm:$0xff] %v1613_v23  ;;  %v1467_v25 = vadd.f32 %v1466_v34, %v2960_v42  ;;  %v1617_v28 = vadd.f32 %v1616_v20, %v973_v41  ;;  %v1468_v52 = vpop.f32.mrb[55].mxu0  ;;  %v1618_v54 = vpop.f32.mrb[47].mxu1 }
 0x2f0   : > { %1744 = vst [vmem:[%s2982_s13 + $0x128] sm:$0xff] %v1465_v40  ;;  %1804 = vst [vmem:[%s2982_s13 + $0x308] sm:$0xff] %v1615_v19  ;;  %v1469_v32 = vadd.f32 %v1468_v52, %v2960_v42  ;;  %v1619_v45 = vadd.f32 %v1618_v54, %v973_v41  ;;  %v983_v43 = vpop.permute.xlu0 %982  ;;  %v978_v55 = vpop.permute.xlu1 %977 }
 0x2f1   : > { %1745 = vst [vmem:[%s2982_s13 + $0x130] sm:$0xff] %v1467_v25  ;;  %1805 = vst [vmem:[%s2982_s13 + $0x310] sm:$0xff] %v1617_v28 }
 0x2f2   : > { %1746 = vst [vmem:[%s2982_s13 + $0x138] sm:$0xff] %v1469_v32  ;;  %1806 = vst [vmem:[%s2982_s13 + $0x318] sm:$0xff] %v1619_v45 }
 0x2f4   : > { %v1472_v56 = vpop.f32.mrb[56].mxu0  ;;  %v1622_v37 = vpop.f32.mrb[48].mxu1 }
 0x2f5   : > { %v1473_v57 = vadd.f32 %v1472_v56, %v2966_v47  ;;  %v1623_v58 = vadd.f32 %v1622_v37, %v978_v55  ;;  %v1474_v59 = vpop.f32.mrb[57].mxu0  ;;  %v1624_v60 = vpop.f32.mrb[49].mxu1 }
 0x2f6   : > { %v1475_v42 = vadd.f32 %v1474_v59, %v2966_v47  ;;  %v1625_v31 = vadd.f32 %v1624_v60, %v978_v55  ;;  %v1476_v61 = vpop.f32.mrb[58].mxu0  ;;  %v1626_v27 = vpop.f32.mrb[50].mxu1 }
 0x2f7   : > { %1747 = vst [vmem:[%s2982_s13 + $0x140] sm:$0xff] %v1473_v57  ;;  %1807 = vst [vmem:[%s2982_s13 + $0x320] sm:$0xff] %v1623_v58  ;;  %v1477_v36 = vadd.f32 %v1476_v61, %v2964_v46  ;;  %v1627_v22 = vadd.f32 %v1626_v27, %v983_v43  ;;  %v1478_v1 = vpop.f32.mrb[59].mxu0  ;;  %v1628_v2 = vpop.f32.mrb[51].mxu1 }
 0x2f8   : > { %1748 = vst [vmem:[%s2982_s13 + $0x148] sm:$0xff] %v1475_v42  ;;  %1808 = vst [vmem:[%s2982_s13 + $0x328] sm:$0xff] %v1625_v31  ;;  %v1479_v5 = vadd.f32 %v1478_v1, %v2964_v46  ;;  %v1629_v3 = vadd.f32 %v1628_v2, %v983_v43  ;;  %v993_v47 = vpop.permute.xlu0 %992  ;;  %v988_v4 = vpop.permute.xlu1 %987 }
 0x2f9   : > { %1749 = vst [vmem:[%s2982_s13 + $0x150] sm:$0xff] %v1477_v36  ;;  %1809 = vst [vmem:[%s2982_s13 + $0x330] sm:$0xff] %v1627_v22 }
 0x2fa   : > { %1750 = vst [vmem:[%s2982_s13 + $0x158] sm:$0xff] %v1479_v5  ;;  %1810 = vst [vmem:[%s2982_s13 + $0x338] sm:$0xff] %v1629_v3 }
 0x2fc   : > { %v1482_v6 = vpop.f32.mrb[60].mxu0  ;;  %v1632_v0 = vpop.f32.mrb[52].mxu1 }
 0x2fd   : > { %v1483_v26 = vadd.f32 %v1482_v6, %v2970_v49  ;;  %v1633_v39 = vadd.f32 %v1632_v0, %v988_v4  ;;  %v1484_v62 = vpop.f32.mrb[61].mxu0  ;;  %v1634_v21 = vpop.f32.mrb[53].mxu1 }
 0x2fe   : > { %v1485_v46 = vadd.f32 %v1484_v62, %v2970_v49  ;;  %v1635_v8 = vadd.f32 %v1634_v21, %v988_v4  ;;  %v1486_v9 = vpop.f32.mrb[62].mxu0  ;;  %v1636_v7 = vpop.f32.mrb[54].mxu1 }
 0x2ff   : > { %1751 = vst [vmem:[%s2982_s13 + $0x160] sm:$0xff] %v1483_v26  ;;  %1811 = vst [vmem:[%s2982_s13 + $0x340] sm:$0xff] %v1633_v39  ;;  %v1487_v63 = vadd.f32 %v1486_v9, %v2968_v48  ;;  %v1637_v33 = vadd.f32 %v1636_v7, %v993_v47  ;;  %v1488_v38 = vpop.f32.mrb[63].mxu0  ;;  %v1638_v10 = vpop.f32.mrb[55].mxu1 }
 0x300   : > { %1752 = vst [vmem:[%s2982_s13 + $0x168] sm:$0xff] %v1485_v46  ;;  %1812 = vst [vmem:[%s2982_s13 + $0x348] sm:$0xff] %v1635_v8  ;;  %v1489_v11 = vadd.f32 %v1488_v38, %v2968_v48  ;;  %v1639_v12 = vadd.f32 %v1638_v10, %v993_v47  ;;  %v1003_v49 = vpop.permute.xlu0 %1002  ;;  %v998_v30 = vpop.permute.xlu1 %997 }
 0x301   : > { %1753 = vst [vmem:[%s2982_s13 + $0x170] sm:$0xff] %v1487_v63  ;;  %1813 = vst [vmem:[%s2982_s13 + $0x350] sm:$0xff] %v1637_v33 }
 0x302   : > { %1754 = vst [vmem:[%s2982_s13 + $0x178] sm:$0xff] %v1489_v11  ;;  %1814 = vst [vmem:[%s2982_s13 + $0x358] sm:$0xff] %v1639_v12 }
 0x304   : > { %v1492_v13 = vpop.f32.mrb[64].mxu0  ;;  %v1642_v14 = vpop.f32.mrb[56].mxu1 }
 0x305   : > { %v1493_v50 = vadd.f32 %v1492_v13, %v2974_v53  ;;  %v1643_v15 = vadd.f32 %v1642_v14, %v998_v30  ;;  %v1494_v44 = vpop.f32.mrb[65].mxu0  ;;  %v1644_v41 = vpop.f32.mrb[57].mxu1 }
 0x306   : > { %v1495_v48 = vadd.f32 %v1494_v44, %v2974_v53  ;;  %v1645_v35 = vadd.f32 %v1644_v41, %v998_v30  ;;  %v1496_v24 = vpop.f32.mrb[66].mxu0  ;;  %v1646_v16 = vpop.f32.mrb[58].mxu1 }
 0x307   : > { %1755 = vst [vmem:[%s2982_s13 + $0x180] sm:$0xff] %v1493_v50  ;;  %1815 = vst [vmem:[%s2982_s13 + $0x360] sm:$0xff] %v1643_v15  ;;  %v1497_v29 = vadd.f32 %v1496_v24, %v2972_v51  ;;  %v1647_v23 = vadd.f32 %v1646_v16, %v1003_v49  ;;  %v1498_v17 = vpop.f32.mrb[67].mxu0  ;;  %v1648_v18 = vpop.f32.mrb[59].mxu1 }
 0x308   : > { %1756 = vst [vmem:[%s2982_s13 + $0x188] sm:$0xff] %v1495_v48  ;;  %1816 = vst [vmem:[%s2982_s13 + $0x368] sm:$0xff] %v1645_v35  ;;  %v1499_v40 = vadd.f32 %v1498_v17, %v2972_v51  ;;  %v1649_v19 = vadd.f32 %v1648_v18, %v1003_v49  ;;  %v1008_v53 = vpop.permute.xlu1 %1007  ;;  %v1013_v28 = vpop.permute.xlu0 %1012 }
 0x309   : > { %1757 = vst [vmem:[%s2982_s13 + $0x190] sm:$0xff] %v1497_v29  ;;  %1817 = vst [vmem:[%s2982_s13 + $0x370] sm:$0xff] %v1647_v23 }
 0x30a   : > { %1758 = vst [vmem:[%s2982_s13 + $0x198] sm:$0xff] %v1499_v40  ;;  %1818 = vst [vmem:[%s2982_s13 + $0x378] sm:$0xff] %v1649_v19 }
 0x30c   : > { %v1652_v34 = vpop.f32.mrb[60].mxu1  ;;  %v1018_v43 = vpop.permute.xlu1 %1017 }
 0x30d   : > { %v1653_v20 = vadd.f32 %v1652_v34, %v1008_v53  ;;  %v1654_v25 = vpop.f32.mrb[61].mxu1  ;;  %v1023_v57 = vpop.permute.xlu0 %1022 }
 0x30e   : > { %v1655_v52 = vadd.f32 %v1654_v25, %v1008_v53  ;;  %v1656_v54 = vpop.f32.mrb[62].mxu1 }
 0x30f   : > { %1819 = vst [vmem:[%s2982_s13 + $0x380] sm:$0xff] %v1653_v20  ;;  %v1657_v32 = vadd.f32 %v1656_v54, %v1013_v28  ;;  %v1658_v51 = vpop.f32.mrb[63].mxu1 }
 0x310   : > { %1820 = vst [vmem:[%s2982_s13 + $0x388] sm:$0xff] %v1655_v52  ;;  %v1659_v45 = vadd.f32 %v1658_v51, %v1013_v28  ;;  %v1028_v61 = vpop.permute.xlu1 %1027 }
 0x311   : > { %1821 = vst [vmem:[%s2982_s13 + $0x390] sm:$0xff] %v1657_v32  ;;  %v1033_v1 = vpop.permute.xlu0 %1032 }
 0x312   : > { %1822 = vst [vmem:[%s2982_s13 + $0x398] sm:$0xff] %v1659_v45 }
 0x314   : > { %v1662_v55 = vpop.f32.mrb[64].mxu1  ;;  %v1038_v6 = vpop.permute.xlu1 %1037 }
 0x315   : > { %v1663_v56 = vadd.f32 %v1662_v55, %v1018_v43  ;;  %v1664_v37 = vpop.f32.mrb[65].mxu1  ;;  %v1043_v62 = vpop.permute.xlu0 %1042 }
 0x316   : > { %v1665_v58 = vadd.f32 %v1664_v37, %v1018_v43  ;;  %v1666_v59 = vpop.f32.mrb[66].mxu1 }
 0x317   : > { %1823 = vst [vmem:[%s2982_s13 + $0x3a0] sm:$0xff] %v1663_v56  ;;  %v1667_v60 = vadd.f32 %v1666_v59, %v1023_v57  ;;  %v1668_v42 = vpop.f32.mrb[67].mxu1 }
 0x318   : > { %1824 = vst [vmem:[%s2982_s13 + $0x3a8] sm:$0xff] %v1665_v58  ;;  %v1669_v31 = vadd.f32 %v1668_v42, %v1023_v57 }
 0x319   : > { %1825 = vst [vmem:[%s2982_s13 + $0x3b0] sm:$0xff] %v1667_v60 }
 0x31a   : > { %1826 = vst [vmem:[%s2982_s13 + $0x3b8] sm:$0xff] %v1669_v31 }
 0x31c   : > { %v1672_v27 = vpop.f32.mrb[68].mxu1 }
 0x31d   : > { %v1673_v36 = vadd.f32 %v1672_v27, %v1028_v61  ;;  %v1674_v22 = vpop.f32.mrb[69].mxu1 }
 0x31e   : > { %v1675_v2 = vadd.f32 %v1674_v22, %v1028_v61  ;;  %v1676_v5 = vpop.f32.mrb[70].mxu1 }
 0x31f   : > { %1827 = vst [vmem:[%s2982_s13 + $0x3c0] sm:$0xff] %v1673_v36  ;;  %v1677_v3 = vadd.f32 %v1676_v5, %v1033_v1  ;;  %v1678_v47 = vpop.f32.mrb[71].mxu1 }
 0x320   : > { %1828 = vst [vmem:[%s2982_s13 + $0x3c8] sm:$0xff] %v1675_v2  ;;  %v1679_v4 = vadd.f32 %v1678_v47, %v1033_v1 }
 0x321   : > { %1829 = vst [vmem:[%s2982_s13 + $0x3d0] sm:$0xff] %v1677_v3 }
 0x322   : > { %1830 = vst [vmem:[%s2982_s13 + $0x3d8] sm:$0xff] %v1679_v4 }
 0x324   : > { %v1682_v0 = vpop.f32.mrb[72].mxu1 }
 0x325   : > { %v1683_v26 = vadd.f32 %v1682_v0, %v1038_v6  ;;  %v1684_v39 = vpop.f32.mrb[73].mxu1 }
 0x326   : > { %v1685_v21 = vadd.f32 %v1684_v39, %v1038_v6  ;;  %v1686_v46 = vpop.f32.mrb[74].mxu1 }
 0x327   : > { %1831 = vst [vmem:[%s2982_s13 + $0x3e0] sm:$0xff] %v1683_v26  ;;  %v1687_v8 = vadd.f32 %v1686_v46, %v1043_v62  ;;  %v1688_v9 = vpop.f32.mrb[75].mxu1 }
 0x328   : > { %1832 = vst [vmem:[%s2982_s13 + $0x3e8] sm:$0xff] %v1685_v21  ;;  %v1689_v7 = vadd.f32 %v1688_v9, %v1043_v62 }
 0x329   : > { %1833 = vst [vmem:[%s2982_s13 + $0x3f0] sm:$0xff] %v1687_v8 }
 0x32a   : > { %1834 = vst [vmem:[%s2982_s13 + $0x3f8] sm:$0xff] %v1689_v7 }
 0x32b   : > { %2309 = shalt.err (!%p2306_p10)
}
 0x32c   : > { %s2310_s13 = scalar_lea.hbm %s3226_s12, 16384  ;;  %s2314_s20 = scalar_lea.hbm %s3287_s6, 32768 }
 0x32d   : > { %p2311_p11 = scmp.ne.s32.totalorder %s3226_s12, %s2310_s13  ;;  %p2315_p0 = scmp.lt.u32.totalorder %s3226_s12, %s3287_s6 }
 0x32e   : > { %p2316_p1 = scmp.lt.u32.totalorder %s2314_s20, %s2310_s13  ;;  %p2318_p3 = scmp.lt.u32.totalorder %s2310_s13, %s3226_s12 }
 0x32f   : > { %p2312_p12 = pnand %p2311_p11, %p2462_p4 }
 0x330   : > { %p2317_p2 = por %p2316_p1, %p2315_p0 }
 0x331   : > { %p2313_p13 = pneg %p2312_p12 }
 0x332   : > { %p2319_p5 = por %p2318_p3, %p2317_p2 }
 0x334   : > { %p2320_p6 = pnand %p2319_p5, %p2313_p13 }
 0x336   : > { %2323 = shalt.err (!%p2320_p6)
}
 0x337   : > { %2088 = dma.vmem_to_hbm [thread:$0]  (%p2462_p4), %s3228_s19, 16384, %s3226_s12, %s1841_s24, %s2384_s27, %s2384_s27, %s2385_s30  }
 0x338 PF: > { %p2098_p7 = scmp.ge.s32.totalorder %s2378_s26, 2  ;;  %s1889_s14 = sand.u32 1, %s2358_s21  }
 0x339   : > { %s1890_s17 = scalar_lea.sflag [#allocation3], %s1889_s14 }
 0x33a   : > { %p2092_p9 = pnand %p2098_p7, %p2469_p8 }
 0x33c   : > { %2349 = dma.done.wait (!%p2092_p9), %s1890_s17, 1024  }
 0x33d   : > { %2351 = vsyncadd (!%p2092_p9), %s1890_s17, 4294966272  ;;  %s1899_s7 = scalar_lea.sflag [#allocation5], %s1889_s14 }
 0x33e   : > { %2353 = dma.done.wait (!%p2092_p9), %s1899_s7, 16384  }
 0x33f   : > { %2355 = vsyncadd (!%p2092_p9), %s1899_s7, 4294950912  ;;  %s23_s26 = sadd.s32 1, %s2378_s26   ;;  %s3290_s21 = smov %s2362_s22 }
 0x340   : > { %p20_p10 = scmp.ge.s32.totalorder %s23_s26, 4   ;;  %s3291_s22 = smov %s2366_s23 }
 0x341   : > { %s3292_s23 = smov %s2475_s10  ;;  %s3293_s24 = smov %s2374_s25 }
 0x342   : > { %s3294_s25 = smov %s3296_s29  ;;  %22 = sbr.rel (!%p20_p10) target bundleno = 6 (0x6), region = 93 }
 0x349   :  { %1904 = vsyncpa [#allocation3], 1 }
 0x34a   :  { %1906 = vsyncpa [#allocation3 + $0x1], 1 }
 0x34b   :  { %1907 = vsyncpa [#allocation5], 1 }
 0x34c   :  { %1909 = vsyncpa [#allocation5 + $0x1], 1 }

</bundles_post_ra>
